<compile_context>
chip_gen: v6e
topology: v6e:2x2x1
jax: 0.10.0
libtpu: 0.0.40
codegen_flags: <defaults>
</compile_context>

<pallas_src>
import math

import numpy as np
import jax
import jax.numpy as jnp
from jax import lax
from jax.experimental import pallas as pl
from jax.experimental.pallas import tpu as pltpu

BN_EPS = 1e-5
LANE = 128

LAYER_CFG = {
    "conv1":    dict(cin=3,  cout=64, k=7, s=2, p=3),
    "conv2":    dict(cin=64, cout=64, k=3, s=2, p=1),
    "conv3":    dict(cin=64, cout=32, k=3, s=2, p=1),
    "conv_out": dict(cin=32, cout=1,  k=1, s=1, p=0),
}


# --------------------------------------------------------------------------
# Host-side helpers (geometry, conv1 im2col, constant tap-selection matrices)
# --------------------------------------------------------------------------
def _out_hw(h, w, k, s, p):
    return (h + 2 * p - k) // s + 1, (w + 2 * p - k) // s + 1


def _im2col(x_nchw, kh, kw, stride, pad):
    """im2col of the raw input (K ordered C-major, then kh, kw — matches
    PyTorch's Conv2d weight reshape (Cout, Cin*kh*kw))."""
    N, C, H, W = x_nchw.shape
    xp = jnp.pad(x_nchw, ((0, 0), (0, 0), (pad, pad), (pad, pad)))
    Ho, Wo = _out_hw(H, W, kh, stride, pad)
    cols = []
    for i in range(kh):
        for j in range(kw):
            cols.append(xp[:, :, i:i + stride * Ho:stride, j:j + stride * Wo:stride])
    cols = jnp.stack(cols, axis=0).reshape(kh, kw, N, C, Ho, Wo)
    cols = jnp.transpose(cols, (2, 4, 5, 3, 0, 1))          # (N, Ho, Wo, C, kh, kw)
    return cols.reshape(N * Ho * Wo, C * kh * kw), Ho, Wo


def _tap_select(N, Hin, Win, k, stride, pad):
    """Constant 0/1 matrices S[t] of shape (M_out, M_in): S[t] @ feat gathers,
    for kernel tap t=(dh,dw), the source rows of a k x k convolution (zero row
    for padding).  Computed once at trace time with numpy."""
    Ho, Wo = _out_hw(Hin, Win, k, stride, pad)
    Mo, Mi = N * Ho * Wo, N * Hin * Win
    S = np.zeros((k * k, Mo, Mi), np.float32)
    for dh in range(k):
        for dw in range(k):
            t = dh * k + dw
            for n in range(N):
                for ho in range(Ho):
                    hi = ho * stride + dh - pad
                    if not (0 <= hi < Hin):
                        continue
                    for wo in range(Wo):
                        wi = wo * stride + dw - pad
                        if 0 <= wi < Win:
                            S[t, (n * Ho + ho) * Wo + wo,
                              (n * Hin + hi) * Win + wi] = 1.0
    return S, Ho, Wo


def _pad_axis(a, axis, size):
    pads = [(0, 0)] * a.ndim
    pads[axis] = (0, size - a.shape[axis])
    return jnp.pad(a, pads)


def _pad_last2(a, rows, cols):
    return _pad_axis(_pad_axis(a, -1, cols), -2, rows)


# --------------------------------------------------------------------------
# The fused Pallas kernel: 4 x (im2col GEMM -> BN(train) -> ReLU) in VMEM
# --------------------------------------------------------------------------
def _make_fused_kernel(M1, M2, M3):
    inv1, inv2, inv3 = 1.0 / M1, 1.0 / M2, 1.0 / M3

    def bn_relu(acc, inv_m, g, b):
        # Training-mode BatchNorm (biased variance) with folded scale/shift.
        mean = jnp.sum(acc, axis=0, keepdims=True) * inv_m
        var = jnp.sum((acc - mean) ** 2, axis=0, keepdims=True) * inv_m
        scale = lax.rsqrt(var + BN_EPS) * g
        shift = b - mean * scale
        return jnp.maximum(acc * scale + shift, 0.0)

    def kernel(p1_ref, w1_ref, gb_ref, s2_ref, w2_ref, s3_ref, w3_ref, w4_ref,
               xg_ref, pg_ref):
        gb = gb_ref[...]                                            # (8, 128) f32

        # ---- conv1: host-built patches, bf16 MXU GEMM, f32 accumulate ------
        a1 = jnp.dot(p1_ref[...], w1_ref[...],
                     preferred_element_type=jnp.float32)            # (M1, 128)
        f1 = bn_relu(a1, inv1, gb[0:1, :], gb[1:2, :]).astype(jnp.bfloat16)

        # ---- conv2: 3x3, patches gathered in-VMEM via tap-select matmuls ---
        a2 = None
        for t in range(9):
            p2t = jnp.dot(s2_ref[t], f1,
                          preferred_element_type=jnp.float32)       # (M2, 128)
            term = jnp.dot(p2t.astype(jnp.bfloat16), w2_ref[t],
                           preferred_element_type=jnp.float32)
            a2 = term if a2 is None else a2 + term
        f2 = bn_relu(a2, inv2, gb[2:3, :], gb[3:4, :]).astype(jnp.bfloat16)

        # ---- conv3: same tap-select scheme ---------------------------------
        a3 = None
        for t in range(9):
            p3t = jnp.dot(s3_ref[t], f2,
                          preferred_element_type=jnp.float32)       # (M3, 128)
            term = jnp.dot(p3t.astype(jnp.bfloat16), w3_ref[t],
                           preferred_element_type=jnp.float32)
            a3 = term if a3 is None else a3 + term
        xg = bn_relu(a3, inv3, gb[4:5, :], gb[5:6, :])
        xg_ref[...] = xg                                            # lane-dense store

        # ---- conv_out: 1x1 conv = plain GEMM -------------------------------
        a4 = jnp.dot(xg.astype(jnp.bfloat16), w4_ref[...],
                     preferred_element_type=jnp.float32)
        pg_ref[...] = bn_relu(a4, inv3, gb[6:7, :], gb[7:8, :])

    return kernel


# --------------------------------------------------------------------------
# Public forward pass (NCHW in / NCHW out, like the PyTorch module)
# --------------------------------------------------------------------------
def texture_encoder(x_nchw, params):
    N = x_nchw.shape[0]
    w1 = params["conv1"]["w"]
    w2 = params["conv2"]["w"]
    w3 = params["conv3"]["w"]
    w4 = params["conv_out"]["w"]
    c1, c2, c3, c4 = w1.shape[0], w2.shape[0], w3.shape[0], w4.shape[0]

    # conv1 patches (only the raw 3-channel input is im2col'd on the host).
    p1, Ho1, Wo1 = _im2col(x_nchw, 7, 7, 2, 3)
    K1 = p1.shape[1]                                   # 147
    K1P = ((K1 + LANE - 1) // LANE) * LANE             # 256
    p1 = _pad_axis(p1, -1, K1P).astype(jnp.bfloat16)

    # Constant spatial tap-selection matrices (trace-time constants).
    S2_np, Ho2, Wo2 = _tap_select(N, Ho1, Wo1, 3, 2, 1)
    S3_np, Ho3, Wo3 = _tap_select(N, Ho2, Wo2, 3, 2, 1)
    M1, M2, M3 = N * Ho1 * Wo1, N * Ho2 * Wo2, N * Ho3 * Wo3
    s2 = jnp.asarray(S2_np, dtype=jnp.bfloat16)        # (9, M2, M1)
    s3 = jnp.asarray(S3_np, dtype=jnp.bfloat16)        # (9, M3, M2)

    # Lane-dense (128-padded) bf16 weight operands.
    w1m = _pad_last2(jnp.transpose(w1.reshape(c1, K1)), K1P, LANE).astype(jnp.bfloat16)
    w2t = _pad_last2(jnp.transpose(w2, (2, 3, 1, 0)).reshape(9, w2.shape[1], c2),
                     LANE, LANE).astype(jnp.bfloat16)  # (9, 128, 128)
    w3t = _pad_last2(jnp.transpose(w3, (2, 3, 1, 0)).reshape(9, w3.shape[1], c3),
                     LANE, LANE).astype(jnp.bfloat16)  # (9, 128, 128)
    w4m = _pad_last2(jnp.transpose(w4.reshape(c4, w4.shape[1])),
                     LANE, LANE).astype(jnp.bfloat16)  # (128, 128)

    # All BN gammas/betas packed into one (8, 128) f32 block (pad entries 0,
    # which keeps padded channels exactly zero through BN + ReLU).
    rows = []
    for name in ("conv1", "conv2", "conv3", "conv_out"):
        rows.append(_pad_axis(params[name]["gamma"], -1, LANE))
        rows.append(_pad_axis(params[name]["beta"], -1, LANE))
    gb = jnp.stack(rows, axis=0).astype(jnp.float32)

    kernel = _make_fused_kernel(M1, M2, M3)

    def spec2(a):
        return pl.BlockSpec(a.shape, lambda i: (0, 0))

    def spec3(a):
        return pl.BlockSpec(a.shape, lambda i: (0, 0, 0))

    xg_p, pg_p = pl.pallas_call(
        kernel,
        grid=(1,),
        in_specs=[spec2(p1), spec2(w1m), spec2(gb),
                  spec3(s2), spec3(w2t), spec3(s3), spec3(w3t), spec2(w4m)],
        out_specs=(pl.BlockSpec((M3, LANE), lambda i: (0, 0)),
                   pl.BlockSpec((M3, LANE), lambda i: (0, 0))),
        out_shape=(jax.ShapeDtypeStruct((M3, LANE), jnp.float32),
                   jax.ShapeDtypeStruct((M3, LANE), jnp.float32)),
        compiler_params=pltpu.CompilerParams(
            dimension_semantics=("arbitrary",)),
    )(p1, w1m, gb, s2, w2t, s3, w3t, w4m)

    # Single NHWC -> NCHW transpose at the public boundary.
    xg = jnp.transpose(xg_p[:, :c3].reshape(N, Ho3, Wo3, c3), (0, 3, 1, 2))
    pg = jnp.transpose(pg_p[:, :c4].reshape(N, Ho3, Wo3, c4), (0, 3, 1, 2))
    return xg, pg


# --------------------------------------------------------------------------
# Deterministic parameter init (mirrors ConvBR.init_weight: kaiming_normal_,
# a=1 => std = 1/sqrt(fan_in); BatchNorm gamma=1, beta=0)
# --------------------------------------------------------------------------
def init_params(key):
    params = {}
    for name, cfg in LAYER_CFG.items():
        key, sub = jax.random.split(key)
        fan_in = cfg["cin"] * cfg["k"] ** 2
        std = math.sqrt(2.0 / (1.0 + 1.0 ** 2)) / math.sqrt(fan_in)
        params[name] = dict(
            w=(jax.random.normal(sub, (cfg["cout"], cfg["cin"], cfg["k"], cfg["k"]),
                                 jnp.float32) * std),
            gamma=jnp.ones((cfg["cout"],), jnp.float32),
            beta=jnp.zeros((cfg["cout"],), jnp.float32),
        )
    return params


# --------------------------------------------------------------------------
# Pure-JAX reference (HIGHEST-precision conv + train-mode BN + ReLU)
# --------------------------------------------------------------------------
def _convbr_ref(x, layer, stride, padding):
    y = lax.conv_general_dilated(
        x, layer["w"], (stride, stride),
        [(padding, padding), (padding, padding)],
        dimension_numbers=("NCHW", "OIHW", "NCHW"),
        precision=lax.Precision.HIGHEST)
    mean = jnp.mean(y, axis=(0, 2, 3), keepdims=True)
    var = jnp.mean((y - mean) ** 2, axis=(0, 2, 3), keepdims=True)
    g = layer["gamma"].reshape(1, -1, 1, 1)
    b = layer["beta"].reshape(1, -1, 1, 1)
    return jnp.maximum((y - mean) * lax.rsqrt(var + BN_EPS) * g + b, 0.0)


def texture_encoder_ref(x, params):
    feat = _convbr_ref(x, params["conv1"], 2, 3)
    feat = _convbr_ref(feat, params["conv2"], 2, 1)
    xg = _convbr_ref(feat, params["conv3"], 2, 1)
    pg = _convbr_ref(xg, params["conv_out"], 1, 0)
    return xg, pg


if __name__ == "__main__":
    key = jax.random.PRNGKey(0)
    pkey, xkey = jax.random.split(key)
    params = init_params(pkey)
    x = jax.random.normal(xkey, (2, 3, 16, 16), jnp.float32)   # NCHW, like PyTorch

    xg, pg = jax.jit(texture_encoder)(x, params)
    jax.block_until_ready((xg, pg))

    assert xg.shape == (2, 32, 2, 2), xg.shape
    assert pg.shape == (2, 1, 2, 2), pg.shape

    xg_ref, pg_ref = texture_encoder_ref(x, params)
    # bf16 MXU inputs (f32 accumulation) vs f32 HIGHEST-precision reference.
    assert jnp.allclose(xg, xg_ref, rtol=5e-2, atol=5e-2)
    assert jnp.allclose(pg, pg_ref, rtol=5e-2, atol=5e-2)

    print("KERNEL_OK")
</pallas_src>

<mosaic_0001>
module attributes {stable_mosaic.version = 11 : i64} {
  func.func @kernel(%arg0: i32, %arg1: memref<128x256xbf16, #tpu.memory_space<vmem>>, %arg2: memref<256x128xbf16, #tpu.memory_space<vmem>>, %arg3: memref<8x128xf32, #tpu.memory_space<vmem>>, %arg4: memref<9x32x128xbf16, #tpu.memory_space<vmem>>, %arg5: memref<9x128x128xbf16, #tpu.memory_space<vmem>>, %arg6: memref<9x8x32xbf16, #tpu.memory_space<vmem>>, %arg7: memref<9x128x128xbf16, #tpu.memory_space<vmem>>, %arg8: memref<128x128xbf16, #tpu.memory_space<vmem>>, %arg9: memref<8x128xf32, #tpu.memory_space<vmem>>, %arg10: memref<8x128xf32, #tpu.memory_space<vmem>>) attributes {dimension_semantics = [#tpu.dimension_semantics<arbitrary>], iteration_bounds = array<i64: 1>, scalar_prefetch = 0 : i64, scratch_operands = 0 : i64, tpu.core_type = #tpu.core_type<tc>, window_params = [{pipeline_mode = #tpu.pipeline_mode<synchronous>, transform_indices = @transform_0, window_bounds = array<i64: 128, 256>}, {pipeline_mode = #tpu.pipeline_mode<synchronous>, transform_indices = @transform_1, window_bounds = array<i64: 256, 128>}, {pipeline_mode = #tpu.pipeline_mode<synchronous>, transform_indices = @transform_2, window_bounds = array<i64: 8, 128>}, {pipeline_mode = #tpu.pipeline_mode<synchronous>, transform_indices = @transform_3, window_bounds = array<i64: 9, 32, 128>}, {pipeline_mode = #tpu.pipeline_mode<synchronous>, transform_indices = @transform_4, window_bounds = array<i64: 9, 128, 128>}, {pipeline_mode = #tpu.pipeline_mode<synchronous>, transform_indices = @transform_5, window_bounds = array<i64: 9, 8, 32>}, {pipeline_mode = #tpu.pipeline_mode<synchronous>, transform_indices = @transform_6, window_bounds = array<i64: 9, 128, 128>}, {pipeline_mode = #tpu.pipeline_mode<synchronous>, transform_indices = @transform_7, window_bounds = array<i64: 128, 128>}, {pipeline_mode = #tpu.pipeline_mode<synchronous>, transform_indices = @transform_8, window_bounds = array<i64: 8, 128>}, {pipeline_mode = #tpu.pipeline_mode<synchronous>, transform_indices = @transform_9, window_bounds = array<i64: 8, 128>}]} {
    %c0 = arith.constant 0 : index
    %c0_0 = arith.constant 0 : index
    %0 = vector.load %arg3[%c0, %c0_0] : memref<8x128xf32, #tpu.memory_space<vmem>>, vector<8x128xf32>
    %c0_1 = arith.constant 0 : index
    %c0_2 = arith.constant 0 : index
    %1 = vector.load %arg1[%c0_1, %c0_2] : memref<128x256xbf16, #tpu.memory_space<vmem>>, vector<128x256xbf16>
    %c0_3 = arith.constant 0 : index
    %c0_4 = arith.constant 0 : index
    %2 = vector.load %arg2[%c0_3, %c0_4] : memref<256x128xbf16, #tpu.memory_space<vmem>>, vector<256x128xbf16>
    %cst = arith.constant dense<0.000000e+00> : vector<128x128xf32>
    %3 = tpu.matmul %1, %2, %cst {dimension_numbers = #tpu.dot_dimension_numbers<[1], [0], [0], [1], [0, 0, 1, 1], [], []>} : vector<128x256xbf16>, vector<256x128xbf16>, vector<128x128xf32> -> vector<128x128xf32>
    %4 = vector.extract_strided_slice %0 {offsets = [0, 0], sizes = [1, 128], strides = [1, 1]} : vector<8x128xf32> to vector<1x128xf32>
    %5 = vector.extract_strided_slice %0 {offsets = [1, 0], sizes = [1, 128], strides = [1, 1]} : vector<8x128xf32> to vector<1x128xf32>
    %cst_5 = arith.constant dense<0.000000e+00> : vector<128xf32>
    %6 = vector.multi_reduction <add>, %3, %cst_5 [0] : vector<128x128xf32> to vector<128xf32>
    %7 = vector.shape_cast %6 : vector<128xf32> to vector<1x128xf32>
    %cst_6 = arith.constant 7.812500e-03 : f32
    %8 = vector.broadcast %cst_6 : f32 to vector<1x128xf32>
    %9 = arith.mulf %7, %8 : vector<1x128xf32>
    %10 = vector.broadcast %9 : vector<1x128xf32> to vector<128x128xf32>
    %11 = arith.subf %3, %10 : vector<128x128xf32>
    %12 = arith.mulf %11, %11 : vector<128x128xf32>
    %cst_7 = arith.constant dense<0.000000e+00> : vector<128xf32>
    %13 = vector.multi_reduction <add>, %12, %cst_7 [0] : vector<128x128xf32> to vector<128xf32>
    %14 = vector.shape_cast %13 : vector<128xf32> to vector<1x128xf32>
    %cst_8 = arith.constant 7.812500e-03 : f32
    %15 = vector.broadcast %cst_8 : f32 to vector<1x128xf32>
    %16 = arith.mulf %14, %15 : vector<1x128xf32>
    %cst_9 = arith.constant 9.99999974E-6 : f32
    %17 = vector.broadcast %cst_9 : f32 to vector<1x128xf32>
    %18 = arith.addf %16, %17 : vector<1x128xf32>
    %19 = math.rsqrt %18 : vector<1x128xf32>
    %20 = arith.mulf %19, %4 : vector<1x128xf32>
    %21 = arith.mulf %9, %20 : vector<1x128xf32>
    %22 = arith.subf %5, %21 : vector<1x128xf32>
    %23 = vector.broadcast %20 : vector<1x128xf32> to vector<128x128xf32>
    %24 = arith.mulf %3, %23 : vector<128x128xf32>
    %25 = vector.broadcast %22 : vector<1x128xf32> to vector<128x128xf32>
    %26 = arith.addf %24, %25 : vector<128x128xf32>
    %cst_10 = arith.constant 0.000000e+00 : f32
    %27 = vector.broadcast %cst_10 : f32 to vector<128x128xf32>
    %28 = arith.maximumf %26, %27 : vector<128x128xf32>
    %29 = arith.truncf %28 : vector<128x128xf32> to vector<128x128xbf16>
    %c0_11 = arith.constant 0 : index
    %c0_12 = arith.constant 0 : index
    %c0_13 = arith.constant 0 : index
    %30 = vector.load %arg4[%c0_11, %c0_12, %c0_13] : memref<9x32x128xbf16, #tpu.memory_space<vmem>>, vector<1x32x128xbf16>
    %31 = vector.shape_cast %30 : vector<1x32x128xbf16> to vector<32x128xbf16>
    %cst_14 = arith.constant dense<0.000000e+00> : vector<32x128xf32>
    %32 = tpu.matmul %31, %29, %cst_14 {dimension_numbers = #tpu.dot_dimension_numbers<[1], [0], [0], [1], [0, 0, 1, 1], [], []>} : vector<32x128xbf16>, vector<128x128xbf16>, vector<32x128xf32> -> vector<32x128xf32>
    %33 = arith.truncf %32 : vector<32x128xf32> to vector<32x128xbf16>
    %c0_15 = arith.constant 0 : index
    %c0_16 = arith.constant 0 : index
    %c0_17 = arith.constant 0 : index
    %34 = vector.load %arg5[%c0_15, %c0_16, %c0_17] : memref<9x128x128xbf16, #tpu.memory_space<vmem>>, vector<1x128x128xbf16>
    %35 = vector.shape_cast %34 : vector<1x128x128xbf16> to vector<128x128xbf16>
    %cst_18 = arith.constant dense<0.000000e+00> : vector<32x128xf32>
    %36 = tpu.matmul %33, %35, %cst_18 {dimension_numbers = #tpu.dot_dimension_numbers<[1], [0], [0], [1], [0, 0, 1, 1], [], []>} : vector<32x128xbf16>, vector<128x128xbf16>, vector<32x128xf32> -> vector<32x128xf32>
    %c1 = arith.constant 1 : index
    %c0_19 = arith.constant 0 : index
    %c0_20 = arith.constant 0 : index
    %37 = vector.load %arg4[%c1, %c0_19, %c0_20] : memref<9x32x128xbf16, #tpu.memory_space<vmem>>, vector<1x32x128xbf16>
    %38 = vector.shape_cast %37 : vector<1x32x128xbf16> to vector<32x128xbf16>
    %cst_21 = arith.constant dense<0.000000e+00> : vector<32x128xf32>
    %39 = tpu.matmul %38, %29, %cst_21 {dimension_numbers = #tpu.dot_dimension_numbers<[1], [0], [0], [1], [0, 0, 1, 1], [], []>} : vector<32x128xbf16>, vector<128x128xbf16>, vector<32x128xf32> -> vector<32x128xf32>
    %40 = arith.truncf %39 : vector<32x128xf32> to vector<32x128xbf16>
    %c1_22 = arith.constant 1 : index
    %c0_23 = arith.constant 0 : index
    %c0_24 = arith.constant 0 : index
    %41 = vector.load %arg5[%c1_22, %c0_23, %c0_24] : memref<9x128x128xbf16, #tpu.memory_space<vmem>>, vector<1x128x128xbf16>
    %42 = vector.shape_cast %41 : vector<1x128x128xbf16> to vector<128x128xbf16>
    %cst_25 = arith.constant dense<0.000000e+00> : vector<32x128xf32>
    %43 = tpu.matmul %40, %42, %cst_25 {dimension_numbers = #tpu.dot_dimension_numbers<[1], [0], [0], [1], [0, 0, 1, 1], [], []>} : vector<32x128xbf16>, vector<128x128xbf16>, vector<32x128xf32> -> vector<32x128xf32>
    %44 = arith.addf %36, %43 : vector<32x128xf32>
    %c2 = arith.constant 2 : index
    %c0_26 = arith.constant 0 : index
    %c0_27 = arith.constant 0 : index
    %45 = vector.load %arg4[%c2, %c0_26, %c0_27] : memref<9x32x128xbf16, #tpu.memory_space<vmem>>, vector<1x32x128xbf16>
    %46 = vector.shape_cast %45 : vector<1x32x128xbf16> to vector<32x128xbf16>
    %cst_28 = arith.constant dense<0.000000e+00> : vector<32x128xf32>
    %47 = tpu.matmul %46, %29, %cst_28 {dimension_numbers = #tpu.dot_dimension_numbers<[1], [0], [0], [1], [0, 0, 1, 1], [], []>} : vector<32x128xbf16>, vector<128x128xbf16>, vector<32x128xf32> -> vector<32x128xf32>
    %48 = arith.truncf %47 : vector<32x128xf32> to vector<32x128xbf16>
    %c2_29 = arith.constant 2 : index
    %c0_30 = arith.constant 0 : index
    %c0_31 = arith.constant 0 : index
    %49 = vector.load %arg5[%c2_29, %c0_30, %c0_31] : memref<9x128x128xbf16, #tpu.memory_space<vmem>>, vector<1x128x128xbf16>
    %50 = vector.shape_cast %49 : vector<1x128x128xbf16> to vector<128x128xbf16>
    %cst_32 = arith.constant dense<0.000000e+00> : vector<32x128xf32>
    %51 = tpu.matmul %48, %50, %cst_32 {dimension_numbers = #tpu.dot_dimension_numbers<[1], [0], [0], [1], [0, 0, 1, 1], [], []>} : vector<32x128xbf16>, vector<128x128xbf16>, vector<32x128xf32> -> vector<32x128xf32>
    %52 = arith.addf %44, %51 : vector<32x128xf32>
    %c3 = arith.constant 3 : index
    %c0_33 = arith.constant 0 : index
    %c0_34 = arith.constant 0 : index
    %53 = vector.load %arg4[%c3, %c0_33, %c0_34] : memref<9x32x128xbf16, #tpu.memory_space<vmem>>, vector<1x32x128xbf16>
    %54 = vector.shape_cast %53 : vector<1x32x128xbf16> to vector<32x128xbf16>
    %cst_35 = arith.constant dense<0.000000e+00> : vector<32x128xf32>
    %55 = tpu.matmul %54, %29, %cst_35 {dimension_numbers = #tpu.dot_dimension_numbers<[1], [0], [0], [1], [0, 0, 1, 1], [], []>} : vector<32x128xbf16>, vector<128x128xbf16>, vector<32x128xf32> -> vector<32x128xf32>
    %56 = arith.truncf %55 : vector<32x128xf32> to vector<32x128xbf16>
    %c3_36 = arith.constant 3 : index
    %c0_37 = arith.constant 0 : index
    %c0_38 = arith.constant 0 : index
    %57 = vector.load %arg5[%c3_36, %c0_37, %c0_38] : memref<9x128x128xbf16, #tpu.memory_space<vmem>>, vector<1x128x128xbf16>
    %58 = vector.shape_cast %57 : vector<1x128x128xbf16> to vector<128x128xbf16>
    %cst_39 = arith.constant dense<0.000000e+00> : vector<32x128xf32>
    %59 = tpu.matmul %56, %58, %cst_39 {dimension_numbers = #tpu.dot_dimension_numbers<[1], [0], [0], [1], [0, 0, 1, 1], [], []>} : vector<32x128xbf16>, vector<128x128xbf16>, vector<32x128xf32> -> vector<32x128xf32>
    %60 = arith.addf %52, %59 : vector<32x128xf32>
    %c4 = arith.constant 4 : index
    %c0_40 = arith.constant 0 : index
    %c0_41 = arith.constant 0 : index
    %61 = vector.load %arg4[%c4, %c0_40, %c0_41] : memref<9x32x128xbf16, #tpu.memory_space<vmem>>, vector<1x32x128xbf16>
    %62 = vector.shape_cast %61 : vector<1x32x128xbf16> to vector<32x128xbf16>
    %cst_42 = arith.constant dense<0.000000e+00> : vector<32x128xf32>
    %63 = tpu.matmul %62, %29, %cst_42 {dimension_numbers = #tpu.dot_dimension_numbers<[1], [0], [0], [1], [0, 0, 1, 1], [], []>} : vector<32x128xbf16>, vector<128x128xbf16>, vector<32x128xf32> -> vector<32x128xf32>
    %64 = arith.truncf %63 : vector<32x128xf32> to vector<32x128xbf16>
    %c4_43 = arith.constant 4 : index
    %c0_44 = arith.constant 0 : index
    %c0_45 = arith.constant 0 : index
    %65 = vector.load %arg5[%c4_43, %c0_44, %c0_45] : memref<9x128x128xbf16, #tpu.memory_space<vmem>>, vector<1x128x128xbf16>
    %66 = vector.shape_cast %65 : vector<1x128x128xbf16> to vector<128x128xbf16>
    %cst_46 = arith.constant dense<0.000000e+00> : vector<32x128xf32>
    %67 = tpu.matmul %64, %66, %cst_46 {dimension_numbers = #tpu.dot_dimension_numbers<[1], [0], [0], [1], [0, 0, 1, 1], [], []>} : vector<32x128xbf16>, vector<128x128xbf16>, vector<32x128xf32> -> vector<32x128xf32>
    %68 = arith.addf %60, %67 : vector<32x128xf32>
    %c5 = arith.constant 5 : index
    %c0_47 = arith.constant 0 : index
    %c0_48 = arith.constant 0 : index
    %69 = vector.load %arg4[%c5, %c0_47, %c0_48] : memref<9x32x128xbf16, #tpu.memory_space<vmem>>, vector<1x32x128xbf16>
    %70 = vector.shape_cast %69 : vector<1x32x128xbf16> to vector<32x128xbf16>
    %cst_49 = arith.constant dense<0.000000e+00> : vector<32x128xf32>
    %71 = tpu.matmul %70, %29, %cst_49 {dimension_numbers = #tpu.dot_dimension_numbers<[1], [0], [0], [1], [0, 0, 1, 1], [], []>} : vector<32x128xbf16>, vector<128x128xbf16>, vector<32x128xf32> -> vector<32x128xf32>
    %72 = arith.truncf %71 : vector<32x128xf32> to vector<32x128xbf16>
    %c5_50 = arith.constant 5 : index
    %c0_51 = arith.constant 0 : index
    %c0_52 = arith.constant 0 : index
    %73 = vector.load %arg5[%c5_50, %c0_51, %c0_52] : memref<9x128x128xbf16, #tpu.memory_space<vmem>>, vector<1x128x128xbf16>
    %74 = vector.shape_cast %73 : vector<1x128x128xbf16> to vector<128x128xbf16>
    %cst_53 = arith.constant dense<0.000000e+00> : vector<32x128xf32>
    %75 = tpu.matmul %72, %74, %cst_53 {dimension_numbers = #tpu.dot_dimension_numbers<[1], [0], [0], [1], [0, 0, 1, 1], [], []>} : vector<32x128xbf16>, vector<128x128xbf16>, vector<32x128xf32> -> vector<32x128xf32>
    %76 = arith.addf %68, %75 : vector<32x128xf32>
    %c6 = arith.constant 6 : index
    %c0_54 = arith.constant 0 : index
    %c0_55 = arith.constant 0 : index
    %77 = vector.load %arg4[%c6, %c0_54, %c0_55] : memref<9x32x128xbf16, #tpu.memory_space<vmem>>, vector<1x32x128xbf16>
    %78 = vector.shape_cast %77 : vector<1x32x128xbf16> to vector<32x128xbf16>
    %cst_56 = arith.constant dense<0.000000e+00> : vector<32x128xf32>
    %79 = tpu.matmul %78, %29, %cst_56 {dimension_numbers = #tpu.dot_dimension_numbers<[1], [0], [0], [1], [0, 0, 1, 1], [], []>} : vector<32x128xbf16>, vector<128x128xbf16>, vector<32x128xf32> -> vector<32x128xf32>
    %80 = arith.truncf %79 : vector<32x128xf32> to vector<32x128xbf16>
    %c6_57 = arith.constant 6 : index
    %c0_58 = arith.constant 0 : index
    %c0_59 = arith.constant 0 : index
    %81 = vector.load %arg5[%c6_57, %c0_58, %c0_59] : memref<9x128x128xbf16, #tpu.memory_space<vmem>>, vector<1x128x128xbf16>
    %82 = vector.shape_cast %81 : vector<1x128x128xbf16> to vector<128x128xbf16>
    %cst_60 = arith.constant dense<0.000000e+00> : vector<32x128xf32>
    %83 = tpu.matmul %80, %82, %cst_60 {dimension_numbers = #tpu.dot_dimension_numbers<[1], [0], [0], [1], [0, 0, 1, 1], [], []>} : vector<32x128xbf16>, vector<128x128xbf16>, vector<32x128xf32> -> vector<32x128xf32>
    %84 = arith.addf %76, %83 : vector<32x128xf32>
    %c7 = arith.constant 7 : index
    %c0_61 = arith.constant 0 : index
    %c0_62 = arith.constant 0 : index
    %85 = vector.load %arg4[%c7, %c0_61, %c0_62] : memref<9x32x128xbf16, #tpu.memory_space<vmem>>, vector<1x32x128xbf16>
    %86 = vector.shape_cast %85 : vector<1x32x128xbf16> to vector<32x128xbf16>
    %cst_63 = arith.constant dense<0.000000e+00> : vector<32x128xf32>
    %87 = tpu.matmul %86, %29, %cst_63 {dimension_numbers = #tpu.dot_dimension_numbers<[1], [0], [0], [1], [0, 0, 1, 1], [], []>} : vector<32x128xbf16>, vector<128x128xbf16>, vector<32x128xf32> -> vector<32x128xf32>
    %88 = arith.truncf %87 : vector<32x128xf32> to vector<32x128xbf16>
    %c7_64 = arith.constant 7 : index
    %c0_65 = arith.constant 0 : index
    %c0_66 = arith.constant 0 : index
    %89 = vector.load %arg5[%c7_64, %c0_65, %c0_66] : memref<9x128x128xbf16, #tpu.memory_space<vmem>>, vector<1x128x128xbf16>
    %90 = vector.shape_cast %89 : vector<1x128x128xbf16> to vector<128x128xbf16>
    %cst_67 = arith.constant dense<0.000000e+00> : vector<32x128xf32>
    %91 = tpu.matmul %88, %90, %cst_67 {dimension_numbers = #tpu.dot_dimension_numbers<[1], [0], [0], [1], [0, 0, 1, 1], [], []>} : vector<32x128xbf16>, vector<128x128xbf16>, vector<32x128xf32> -> vector<32x128xf32>
    %92 = arith.addf %84, %91 : vector<32x128xf32>
    %c8 = arith.constant 8 : index
    %c0_68 = arith.constant 0 : index
    %c0_69 = arith.constant 0 : index
    %93 = vector.load %arg4[%c8, %c0_68, %c0_69] : memref<9x32x128xbf16, #tpu.memory_space<vmem>>, vector<1x32x128xbf16>
    %94 = vector.shape_cast %93 : vector<1x32x128xbf16> to vector<32x128xbf16>
    %cst_70 = arith.constant dense<0.000000e+00> : vector<32x128xf32>
    %95 = tpu.matmul %94, %29, %cst_70 {dimension_numbers = #tpu.dot_dimension_numbers<[1], [0], [0], [1], [0, 0, 1, 1], [], []>} : vector<32x128xbf16>, vector<128x128xbf16>, vector<32x128xf32> -> vector<32x128xf32>
    %96 = arith.truncf %95 : vector<32x128xf32> to vector<32x128xbf16>
    %c8_71 = arith.constant 8 : index
    %c0_72 = arith.constant 0 : index
    %c0_73 = arith.constant 0 : index
    %97 = vector.load %arg5[%c8_71, %c0_72, %c0_73] : memref<9x128x128xbf16, #tpu.memory_space<vmem>>, vector<1x128x128xbf16>
    %98 = vector.shape_cast %97 : vector<1x128x128xbf16> to vector<128x128xbf16>
    %cst_74 = arith.constant dense<0.000000e+00> : vector<32x128xf32>
    %99 = tpu.matmul %96, %98, %cst_74 {dimension_numbers = #tpu.dot_dimension_numbers<[1], [0], [0], [1], [0, 0, 1, 1], [], []>} : vector<32x128xbf16>, vector<128x128xbf16>, vector<32x128xf32> -> vector<32x128xf32>
    %100 = arith.addf %92, %99 : vector<32x128xf32>
    %101 = vector.extract_strided_slice %0 {offsets = [2, 0], sizes = [1, 128], strides = [1, 1]} : vector<8x128xf32> to vector<1x128xf32>
    %102 = vector.extract_strided_slice %0 {offsets = [3, 0], sizes = [1, 128], strides = [1, 1]} : vector<8x128xf32> to vector<1x128xf32>
    %cst_75 = arith.constant dense<0.000000e+00> : vector<128xf32>
    %103 = vector.multi_reduction <add>, %100, %cst_75 [0] : vector<32x128xf32> to vector<128xf32>
    %104 = vector.shape_cast %103 : vector<128xf32> to vector<1x128xf32>
    %cst_76 = arith.constant 3.125000e-02 : f32
    %105 = vector.broadcast %cst_76 : f32 to vector<1x128xf32>
    %106 = arith.mulf %104, %105 : vector<1x128xf32>
    %107 = vector.broadcast %106 : vector<1x128xf32> to vector<32x128xf32>
    %108 = arith.subf %100, %107 : vector<32x128xf32>
    %109 = arith.mulf %108, %108 : vector<32x128xf32>
    %cst_77 = arith.constant dense<0.000000e+00> : vector<128xf32>
    %110 = vector.multi_reduction <add>, %109, %cst_77 [0] : vector<32x128xf32> to vector<128xf32>
    %111 = vector.shape_cast %110 : vector<128xf32> to vector<1x128xf32>
    %cst_78 = arith.constant 3.125000e-02 : f32
    %112 = vector.broadcast %cst_78 : f32 to vector<1x128xf32>
    %113 = arith.mulf %111, %112 : vector<1x128xf32>
    %cst_79 = arith.constant 9.99999974E-6 : f32
    %114 = vector.broadcast %cst_79 : f32 to vector<1x128xf32>
    %115 = arith.addf %113, %114 : vector<1x128xf32>
    %116 = math.rsqrt %115 : vector<1x128xf32>
    %117 = arith.mulf %116, %101 : vector<1x128xf32>
    %118 = arith.mulf %106, %117 : vector<1x128xf32>
    %119 = arith.subf %102, %118 : vector<1x128xf32>
    %120 = vector.broadcast %117 : vector<1x128xf32> to vector<32x128xf32>
    %121 = arith.mulf %100, %120 : vector<32x128xf32>
    %122 = vector.broadcast %119 : vector<1x128xf32> to vector<32x128xf32>
    %123 = arith.addf %121, %122 : vector<32x128xf32>
    %cst_80 = arith.constant 0.000000e+00 : f32
    %124 = vector.broadcast %cst_80 : f32 to vector<32x128xf32>
    %125 = arith.maximumf %123, %124 : vector<32x128xf32>
    %126 = arith.truncf %125 : vector<32x128xf32> to vector<32x128xbf16>
    %c0_81 = arith.constant 0 : index
    %c0_82 = arith.constant 0 : index
    %c0_83 = arith.constant 0 : index
    %127 = vector.load %arg6[%c0_81, %c0_82, %c0_83] : memref<9x8x32xbf16, #tpu.memory_space<vmem>>, vector<1x8x32xbf16>
    %128 = vector.shape_cast %127 : vector<1x8x32xbf16> to vector<8x32xbf16>
    %cst_84 = arith.constant dense<0.000000e+00> : vector<8x128xf32>
    %129 = tpu.matmul %128, %126, %cst_84 {dimension_numbers = #tpu.dot_dimension_numbers<[1], [0], [0], [1], [0, 0, 1, 1], [], []>} : vector<8x32xbf16>, vector<32x128xbf16>, vector<8x128xf32> -> vector<8x128xf32>
    %130 = arith.truncf %129 : vector<8x128xf32> to vector<8x128xbf16>
    %c0_85 = arith.constant 0 : index
    %c0_86 = arith.constant 0 : index
    %c0_87 = arith.constant 0 : index
    %131 = vector.load %arg7[%c0_85, %c0_86, %c0_87] : memref<9x128x128xbf16, #tpu.memory_space<vmem>>, vector<1x128x128xbf16>
    %132 = vector.shape_cast %131 : vector<1x128x128xbf16> to vector<128x128xbf16>
    %cst_88 = arith.constant dense<0.000000e+00> : vector<8x128xf32>
    %133 = tpu.matmul %130, %132, %cst_88 {dimension_numbers = #tpu.dot_dimension_numbers<[1], [0], [0], [1], [0, 0, 1, 1], [], []>} : vector<8x128xbf16>, vector<128x128xbf16>, vector<8x128xf32> -> vector<8x128xf32>
    %c1_89 = arith.constant 1 : index
    %c0_90 = arith.constant 0 : index
    %c0_91 = arith.constant 0 : index
    %134 = vector.load %arg6[%c1_89, %c0_90, %c0_91] : memref<9x8x32xbf16, #tpu.memory_space<vmem>>, vector<1x8x32xbf16>
    %135 = vector.shape_cast %134 : vector<1x8x32xbf16> to vector<8x32xbf16>
    %cst_92 = arith.constant dense<0.000000e+00> : vector<8x128xf32>
    %136 = tpu.matmul %135, %126, %cst_92 {dimension_numbers = #tpu.dot_dimension_numbers<[1], [0], [0], [1], [0, 0, 1, 1], [], []>} : vector<8x32xbf16>, vector<32x128xbf16>, vector<8x128xf32> -> vector<8x128xf32>
    %137 = arith.truncf %136 : vector<8x128xf32> to vector<8x128xbf16>
    %c1_93 = arith.constant 1 : index
    %c0_94 = arith.constant 0 : index
    %c0_95 = arith.constant 0 : index
    %138 = vector.load %arg7[%c1_93, %c0_94, %c0_95] : memref<9x128x128xbf16, #tpu.memory_space<vmem>>, vector<1x128x128xbf16>
    %139 = vector.shape_cast %138 : vector<1x128x128xbf16> to vector<128x128xbf16>
    %cst_96 = arith.constant dense<0.000000e+00> : vector<8x128xf32>
    %140 = tpu.matmul %137, %139, %cst_96 {dimension_numbers = #tpu.dot_dimension_numbers<[1], [0], [0], [1], [0, 0, 1, 1], [], []>} : vector<8x128xbf16>, vector<128x128xbf16>, vector<8x128xf32> -> vector<8x128xf32>
    %141 = arith.addf %133, %140 : vector<8x128xf32>
    %c2_97 = arith.constant 2 : index
    %c0_98 = arith.constant 0 : index
    %c0_99 = arith.constant 0 : index
    %142 = vector.load %arg6[%c2_97, %c0_98, %c0_99] : memref<9x8x32xbf16, #tpu.memory_space<vmem>>, vector<1x8x32xbf16>
    %143 = vector.shape_cast %142 : vector<1x8x32xbf16> to vector<8x32xbf16>
    %cst_100 = arith.constant dense<0.000000e+00> : vector<8x128xf32>
    %144 = tpu.matmul %143, %126, %cst_100 {dimension_numbers = #tpu.dot_dimension_numbers<[1], [0], [0], [1], [0, 0, 1, 1], [], []>} : vector<8x32xbf16>, vector<32x128xbf16>, vector<8x128xf32> -> vector<8x128xf32>
    %145 = arith.truncf %144 : vector<8x128xf32> to vector<8x128xbf16>
    %c2_101 = arith.constant 2 : index
    %c0_102 = arith.constant 0 : index
    %c0_103 = arith.constant 0 : index
    %146 = vector.load %arg7[%c2_101, %c0_102, %c0_103] : memref<9x128x128xbf16, #tpu.memory_space<vmem>>, vector<1x128x128xbf16>
    %147 = vector.shape_cast %146 : vector<1x128x128xbf16> to vector<128x128xbf16>
    %cst_104 = arith.constant dense<0.000000e+00> : vector<8x128xf32>
    %148 = tpu.matmul %145, %147, %cst_104 {dimension_numbers = #tpu.dot_dimension_numbers<[1], [0], [0], [1], [0, 0, 1, 1], [], []>} : vector<8x128xbf16>, vector<128x128xbf16>, vector<8x128xf32> -> vector<8x128xf32>
    %149 = arith.addf %141, %148 : vector<8x128xf32>
    %c3_105 = arith.constant 3 : index
    %c0_106 = arith.constant 0 : index
    %c0_107 = arith.constant 0 : index
    %150 = vector.load %arg6[%c3_105, %c0_106, %c0_107] : memref<9x8x32xbf16, #tpu.memory_space<vmem>>, vector<1x8x32xbf16>
    %151 = vector.shape_cast %150 : vector<1x8x32xbf16> to vector<8x32xbf16>
    %cst_108 = arith.constant dense<0.000000e+00> : vector<8x128xf32>
    %152 = tpu.matmul %151, %126, %cst_108 {dimension_numbers = #tpu.dot_dimension_numbers<[1], [0], [0], [1], [0, 0, 1, 1], [], []>} : vector<8x32xbf16>, vector<32x128xbf16>, vector<8x128xf32> -> vector<8x128xf32>
    %153 = arith.truncf %152 : vector<8x128xf32> to vector<8x128xbf16>
    %c3_109 = arith.constant 3 : index
    %c0_110 = arith.constant 0 : index
    %c0_111 = arith.constant 0 : index
    %154 = vector.load %arg7[%c3_109, %c0_110, %c0_111] : memref<9x128x128xbf16, #tpu.memory_space<vmem>>, vector<1x128x128xbf16>
    %155 = vector.shape_cast %154 : vector<1x128x128xbf16> to vector<128x128xbf16>
    %cst_112 = arith.constant dense<0.000000e+00> : vector<8x128xf32>
    %156 = tpu.matmul %153, %155, %cst_112 {dimension_numbers = #tpu.dot_dimension_numbers<[1], [0], [0], [1], [0, 0, 1, 1], [], []>} : vector<8x128xbf16>, vector<128x128xbf16>, vector<8x128xf32> -> vector<8x128xf32>
    %157 = arith.addf %149, %156 : vector<8x128xf32>
    %c4_113 = arith.constant 4 : index
    %c0_114 = arith.constant 0 : index
    %c0_115 = arith.constant 0 : index
    %158 = vector.load %arg6[%c4_113, %c0_114, %c0_115] : memref<9x8x32xbf16, #tpu.memory_space<vmem>>, vector<1x8x32xbf16>
    %159 = vector.shape_cast %158 : vector<1x8x32xbf16> to vector<8x32xbf16>
    %cst_116 = arith.constant dense<0.000000e+00> : vector<8x128xf32>
    %160 = tpu.matmul %159, %126, %cst_116 {dimension_numbers = #tpu.dot_dimension_numbers<[1], [0], [0], [1], [0, 0, 1, 1], [], []>} : vector<8x32xbf16>, vector<32x128xbf16>, vector<8x128xf32> -> vector<8x128xf32>
    %161 = arith.truncf %160 : vector<8x128xf32> to vector<8x128xbf16>
    %c4_117 = arith.constant 4 : index
    %c0_118 = arith.constant 0 : index
    %c0_119 = arith.constant 0 : index
    %162 = vector.load %arg7[%c4_117, %c0_118, %c0_119] : memref<9x128x128xbf16, #tpu.memory_space<vmem>>, vector<1x128x128xbf16>
    %163 = vector.shape_cast %162 : vector<1x128x128xbf16> to vector<128x128xbf16>
    %cst_120 = arith.constant dense<0.000000e+00> : vector<8x128xf32>
    %164 = tpu.matmul %161, %163, %cst_120 {dimension_numbers = #tpu.dot_dimension_numbers<[1], [0], [0], [1], [0, 0, 1, 1], [], []>} : vector<8x128xbf16>, vector<128x128xbf16>, vector<8x128xf32> -> vector<8x128xf32>
    %165 = arith.addf %157, %164 : vector<8x128xf32>
    %c5_121 = arith.constant 5 : index
    %c0_122 = arith.constant 0 : index
    %c0_123 = arith.constant 0 : index
    %166 = vector.load %arg6[%c5_121, %c0_122, %c0_123] : memref<9x8x32xbf16, #tpu.memory_space<vmem>>, vector<1x8x32xbf16>
    %167 = vector.shape_cast %166 : vector<1x8x32xbf16> to vector<8x32xbf16>
    %cst_124 = arith.constant dense<0.000000e+00> : vector<8x128xf32>
    %168 = tpu.matmul %167, %126, %cst_124 {dimension_numbers = #tpu.dot_dimension_numbers<[1], [0], [0], [1], [0, 0, 1, 1], [], []>} : vector<8x32xbf16>, vector<32x128xbf16>, vector<8x128xf32> -> vector<8x128xf32>
    %169 = arith.truncf %168 : vector<8x128xf32> to vector<8x128xbf16>
    %c5_125 = arith.constant 5 : index
    %c0_126 = arith.constant 0 : index
    %c0_127 = arith.constant 0 : index
    %170 = vector.load %arg7[%c5_125, %c0_126, %c0_127] : memref<9x128x128xbf16, #tpu.memory_space<vmem>>, vector<1x128x128xbf16>
    %171 = vector.shape_cast %170 : vector<1x128x128xbf16> to vector<128x128xbf16>
    %cst_128 = arith.constant dense<0.000000e+00> : vector<8x128xf32>
    %172 = tpu.matmul %169, %171, %cst_128 {dimension_numbers = #tpu.dot_dimension_numbers<[1], [0], [0], [1], [0, 0, 1, 1], [], []>} : vector<8x128xbf16>, vector<128x128xbf16>, vector<8x128xf32> -> vector<8x128xf32>
    %173 = arith.addf %165, %172 : vector<8x128xf32>
    %c6_129 = arith.constant 6 : index
    %c0_130 = arith.constant 0 : index
    %c0_131 = arith.constant 0 : index
    %174 = vector.load %arg6[%c6_129, %c0_130, %c0_131] : memref<9x8x32xbf16, #tpu.memory_space<vmem>>, vector<1x8x32xbf16>
    %175 = vector.shape_cast %174 : vector<1x8x32xbf16> to vector<8x32xbf16>
    %cst_132 = arith.constant dense<0.000000e+00> : vector<8x128xf32>
    %176 = tpu.matmul %175, %126, %cst_132 {dimension_numbers = #tpu.dot_dimension_numbers<[1], [0], [0], [1], [0, 0, 1, 1], [], []>} : vector<8x32xbf16>, vector<32x128xbf16>, vector<8x128xf32> -> vector<8x128xf32>
    %177 = arith.truncf %176 : vector<8x128xf32> to vector<8x128xbf16>
    %c6_133 = arith.constant 6 : index
    %c0_134 = arith.constant 0 : index
    %c0_135 = arith.constant 0 : index
    %178 = vector.load %arg7[%c6_133, %c0_134, %c0_135] : memref<9x128x128xbf16, #tpu.memory_space<vmem>>, vector<1x128x128xbf16>
    %179 = vector.shape_cast %178 : vector<1x128x128xbf16> to vector<128x128xbf16>
    %cst_136 = arith.constant dense<0.000000e+00> : vector<8x128xf32>
    %180 = tpu.matmul %177, %179, %cst_136 {dimension_numbers = #tpu.dot_dimension_numbers<[1], [0], [0], [1], [0, 0, 1, 1], [], []>} : vector<8x128xbf16>, vector<128x128xbf16>, vector<8x128xf32> -> vector<8x128xf32>
    %181 = arith.addf %173, %180 : vector<8x128xf32>
    %c7_137 = arith.constant 7 : index
    %c0_138 = arith.constant 0 : index
    %c0_139 = arith.constant 0 : index
    %182 = vector.load %arg6[%c7_137, %c0_138, %c0_139] : memref<9x8x32xbf16, #tpu.memory_space<vmem>>, vector<1x8x32xbf16>
    %183 = vector.shape_cast %182 : vector<1x8x32xbf16> to vector<8x32xbf16>
    %cst_140 = arith.constant dense<0.000000e+00> : vector<8x128xf32>
    %184 = tpu.matmul %183, %126, %cst_140 {dimension_numbers = #tpu.dot_dimension_numbers<[1], [0], [0], [1], [0, 0, 1, 1], [], []>} : vector<8x32xbf16>, vector<32x128xbf16>, vector<8x128xf32> -> vector<8x128xf32>
    %185 = arith.truncf %184 : vector<8x128xf32> to vector<8x128xbf16>
    %c7_141 = arith.constant 7 : index
    %c0_142 = arith.constant 0 : index
    %c0_143 = arith.constant 0 : index
    %186 = vector.load %arg7[%c7_141, %c0_142, %c0_143] : memref<9x128x128xbf16, #tpu.memory_space<vmem>>, vector<1x128x128xbf16>
    %187 = vector.shape_cast %186 : vector<1x128x128xbf16> to vector<128x128xbf16>
    %cst_144 = arith.constant dense<0.000000e+00> : vector<8x128xf32>
    %188 = tpu.matmul %185, %187, %cst_144 {dimension_numbers = #tpu.dot_dimension_numbers<[1], [0], [0], [1], [0, 0, 1, 1], [], []>} : vector<8x128xbf16>, vector<128x128xbf16>, vector<8x128xf32> -> vector<8x128xf32>
    %189 = arith.addf %181, %188 : vector<8x128xf32>
    %c8_145 = arith.constant 8 : index
    %c0_146 = arith.constant 0 : index
    %c0_147 = arith.constant 0 : index
    %190 = vector.load %arg6[%c8_145, %c0_146, %c0_147] : memref<9x8x32xbf16, #tpu.memory_space<vmem>>, vector<1x8x32xbf16>
    %191 = vector.shape_cast %190 : vector<1x8x32xbf16> to vector<8x32xbf16>
    %cst_148 = arith.constant dense<0.000000e+00> : vector<8x128xf32>
    %192 = tpu.matmul %191, %126, %cst_148 {dimension_numbers = #tpu.dot_dimension_numbers<[1], [0], [0], [1], [0, 0, 1, 1], [], []>} : vector<8x32xbf16>, vector<32x128xbf16>, vector<8x128xf32> -> vector<8x128xf32>
    %193 = arith.truncf %192 : vector<8x128xf32> to vector<8x128xbf16>
    %c8_149 = arith.constant 8 : index
    %c0_150 = arith.constant 0 : index
    %c0_151 = arith.constant 0 : index
    %194 = vector.load %arg7[%c8_149, %c0_150, %c0_151] : memref<9x128x128xbf16, #tpu.memory_space<vmem>>, vector<1x128x128xbf16>
    %195 = vector.shape_cast %194 : vector<1x128x128xbf16> to vector<128x128xbf16>
    %cst_152 = arith.constant dense<0.000000e+00> : vector<8x128xf32>
    %196 = tpu.matmul %193, %195, %cst_152 {dimension_numbers = #tpu.dot_dimension_numbers<[1], [0], [0], [1], [0, 0, 1, 1], [], []>} : vector<8x128xbf16>, vector<128x128xbf16>, vector<8x128xf32> -> vector<8x128xf32>
    %197 = arith.addf %189, %196 : vector<8x128xf32>
    %198 = vector.extract_strided_slice %0 {offsets = [4, 0], sizes = [1, 128], strides = [1, 1]} : vector<8x128xf32> to vector<1x128xf32>
    %199 = vector.extract_strided_slice %0 {offsets = [5, 0], sizes = [1, 128], strides = [1, 1]} : vector<8x128xf32> to vector<1x128xf32>
    %cst_153 = arith.constant dense<0.000000e+00> : vector<128xf32>
    %200 = vector.multi_reduction <add>, %197, %cst_153 [0] : vector<8x128xf32> to vector<128xf32>
    %201 = vector.shape_cast %200 : vector<128xf32> to vector<1x128xf32>
    %cst_154 = arith.constant 1.250000e-01 : f32
    %202 = vector.broadcast %cst_154 : f32 to vector<1x128xf32>
    %203 = arith.mulf %201, %202 : vector<1x128xf32>
    %204 = vector.broadcast %203 : vector<1x128xf32> to vector<8x128xf32>
    %205 = arith.subf %197, %204 : vector<8x128xf32>
    %206 = arith.mulf %205, %205 : vector<8x128xf32>
    %cst_155 = arith.constant dense<0.000000e+00> : vector<128xf32>
    %207 = vector.multi_reduction <add>, %206, %cst_155 [0] : vector<8x128xf32> to vector<128xf32>
    %208 = vector.shape_cast %207 : vector<128xf32> to vector<1x128xf32>
    %cst_156 = arith.constant 1.250000e-01 : f32
    %209 = vector.broadcast %cst_156 : f32 to vector<1x128xf32>
    %210 = arith.mulf %208, %209 : vector<1x128xf32>
    %cst_157 = arith.constant 9.99999974E-6 : f32
    %211 = vector.broadcast %cst_157 : f32 to vector<1x128xf32>
    %212 = arith.addf %210, %211 : vector<1x128xf32>
    %213 = math.rsqrt %212 : vector<1x128xf32>
    %214 = arith.mulf %213, %198 : vector<1x128xf32>
    %215 = arith.mulf %203, %214 : vector<1x128xf32>
    %216 = arith.subf %199, %215 : vector<1x128xf32>
    %217 = vector.broadcast %214 : vector<1x128xf32> to vector<8x128xf32>
    %218 = arith.mulf %197, %217 : vector<8x128xf32>
    %219 = vector.broadcast %216 : vector<1x128xf32> to vector<8x128xf32>
    %220 = arith.addf %218, %219 : vector<8x128xf32>
    %cst_158 = arith.constant 0.000000e+00 : f32
    %221 = vector.broadcast %cst_158 : f32 to vector<8x128xf32>
    %222 = arith.maximumf %220, %221 : vector<8x128xf32>
    %c0_159 = arith.constant 0 : index
    %c0_160 = arith.constant 0 : index
    %223 = vector.load %arg9[%c0_159, %c0_160] : memref<8x128xf32, #tpu.memory_space<vmem>>, vector<8x128xf32>
    tpu.vector_store %arg9[%c0_159, %c0_160], %222 {strides = array<i32>} : memref<8x128xf32, #tpu.memory_space<vmem>>, vector<8x128xf32>,
    %224 = arith.truncf %222 : vector<8x128xf32> to vector<8x128xbf16>
    %c0_161 = arith.constant 0 : index
    %c0_162 = arith.constant 0 : index
    %225 = vector.load %arg8[%c0_161, %c0_162] : memref<128x128xbf16, #tpu.memory_space<vmem>>, vector<128x128xbf16>
    %cst_163 = arith.constant dense<0.000000e+00> : vector<8x128xf32>
    %226 = tpu.matmul %224, %225, %cst_163 {dimension_numbers = #tpu.dot_dimension_numbers<[1], [0], [0], [1], [0, 0, 1, 1], [], []>} : vector<8x128xbf16>, vector<128x128xbf16>, vector<8x128xf32> -> vector<8x128xf32>
    %227 = vector.extract_strided_slice %0 {offsets = [6, 0], sizes = [1, 128], strides = [1, 1]} : vector<8x128xf32> to vector<1x128xf32>
    %228 = vector.extract_strided_slice %0 {offsets = [7, 0], sizes = [1, 128], strides = [1, 1]} : vector<8x128xf32> to vector<1x128xf32>
    %cst_164 = arith.constant dense<0.000000e+00> : vector<128xf32>
    %229 = vector.multi_reduction <add>, %226, %cst_164 [0] : vector<8x128xf32> to vector<128xf32>
    %230 = vector.shape_cast %229 : vector<128xf32> to vector<1x128xf32>
    %cst_165 = arith.constant 1.250000e-01 : f32
    %231 = vector.broadcast %cst_165 : f32 to vector<1x128xf32>
    %232 = arith.mulf %230, %231 : vector<1x128xf32>
    %233 = vector.broadcast %232 : vector<1x128xf32> to vector<8x128xf32>
    %234 = arith.subf %226, %233 : vector<8x128xf32>
    %235 = arith.mulf %234, %234 : vector<8x128xf32>
    %cst_166 = arith.constant dense<0.000000e+00> : vector<128xf32>
    %236 = vector.multi_reduction <add>, %235, %cst_166 [0] : vector<8x128xf32> to vector<128xf32>
    %237 = vector.shape_cast %236 : vector<128xf32> to vector<1x128xf32>
    %cst_167 = arith.constant 1.250000e-01 : f32
    %238 = vector.broadcast %cst_167 : f32 to vector<1x128xf32>
    %239 = arith.mulf %237, %238 : vector<1x128xf32>
    %cst_168 = arith.constant 9.99999974E-6 : f32
    %240 = vector.broadcast %cst_168 : f32 to vector<1x128xf32>
    %241 = arith.addf %239, %240 : vector<1x128xf32>
    %242 = math.rsqrt %241 : vector<1x128xf32>
    %243 = arith.mulf %242, %227 : vector<1x128xf32>
    %244 = arith.mulf %232, %243 : vector<1x128xf32>
    %245 = arith.subf %228, %244 : vector<1x128xf32>
    %246 = vector.broadcast %243 : vector<1x128xf32> to vector<8x128xf32>
    %247 = arith.mulf %226, %246 : vector<8x128xf32>
    %248 = vector.broadcast %245 : vector<1x128xf32> to vector<8x128xf32>
    %249 = arith.addf %247, %248 : vector<8x128xf32>
    %cst_169 = arith.constant 0.000000e+00 : f32
    %250 = vector.broadcast %cst_169 : f32 to vector<8x128xf32>
    %251 = arith.maximumf %249, %250 : vector<8x128xf32>
    %c0_170 = arith.constant 0 : index
    %c0_171 = arith.constant 0 : index
    %252 = vector.load %arg10[%c0_170, %c0_171] : memref<8x128xf32, #tpu.memory_space<vmem>>, vector<8x128xf32>
    tpu.vector_store %arg10[%c0_170, %c0_171], %251 {strides = array<i32>} : memref<8x128xf32, #tpu.memory_space<vmem>>, vector<8x128xf32>,
    return
  }
  func.func @transform_0(%arg0: i32) -> (i32, i32) {
    %c0_i32 = arith.constant 0 : i32
    %c0_i32_0 = arith.constant 0 : i32
    %c0_i32_1 = arith.constant 0 : i32
    return %c0_i32, %c0_i32_0 : i32, i32
  }
  func.func @transform_1(%arg0: i32) -> (i32, i32) {
    %c0_i32 = arith.constant 0 : i32
    %c0_i32_0 = arith.constant 0 : i32
    %c0_i32_1 = arith.constant 0 : i32
    return %c0_i32, %c0_i32_0 : i32, i32
  }
  func.func @transform_2(%arg0: i32) -> (i32, i32) {
    %c0_i32 = arith.constant 0 : i32
    %c0_i32_0 = arith.constant 0 : i32
    %c0_i32_1 = arith.constant 0 : i32
    return %c0_i32, %c0_i32_0 : i32, i32
  }
  func.func @transform_3(%arg0: i32) -> (i32, i32, i32) {
    %c0_i32 = arith.constant 0 : i32
    %c0_i32_0 = arith.constant 0 : i32
    %c0_i32_1 = arith.constant 0 : i32
    %c0_i32_2 = arith.constant 0 : i32
    return %c0_i32, %c0_i32_0, %c0_i32_1 : i32, i32, i32
  }
  func.func @transform_4(%arg0: i32) -> (i32, i32, i32) {
    %c0_i32 = arith.constant 0 : i32
    %c0_i32_0 = arith.constant 0 : i32
    %c0_i32_1 = arith.constant 0 : i32
    %c0_i32_2 = arith.constant 0 : i32
    return %c0_i32, %c0_i32_0, %c0_i32_1 : i32, i32, i32
  }
  func.func @transform_5(%arg0: i32) -> (i32, i32, i32) {
    %c0_i32 = arith.constant 0 : i32
    %c0_i32_0 = arith.constant 0 : i32
    %c0_i32_1 = arith.constant 0 : i32
    %c0_i32_2 = arith.constant 0 : i32
    return %c0_i32, %c0_i32_0, %c0_i32_1 : i32, i32, i32
  }
  func.func @transform_6(%arg0: i32) -> (i32, i32, i32) {
    %c0_i32 = arith.constant 0 : i32
    %c0_i32_0 = arith.constant 0 : i32
    %c0_i32_1 = arith.constant 0 : i32
    %c0_i32_2 = arith.constant 0 : i32
    return %c0_i32, %c0_i32_0, %c0_i32_1 : i32, i32, i32
  }
  func.func @transform_7(%arg0: i32) -> (i32, i32) {
    %c0_i32 = arith.constant 0 : i32
    %c0_i32_0 = arith.constant 0 : i32
    %c0_i32_1 = arith.constant 0 : i32
    return %c0_i32, %c0_i32_0 : i32, i32
  }
  func.func @transform_8(%arg0: i32) -> (i32, i32) {
    %c0_i32 = arith.constant 0 : i32
    %c0_i32_0 = arith.constant 0 : i32
    %c0_i32_1 = arith.constant 0 : i32
    return %c0_i32, %c0_i32_0 : i32, i32
  }
  func.func @transform_9(%arg0: i32) -> (i32, i32) {
    %c0_i32 = arith.constant 0 : i32
    %c0_i32_0 = arith.constant 0 : i32
    %c0_i32_1 = arith.constant 0 : i32
    return %c0_i32, %c0_i32_0 : i32, i32
  }
}

</mosaic_0001>

<bundles_post_ra>
// kernel: texture_encoder.1
= control target key start
LH: loop header
LB: loop body
LE: loop exit
PB: predicated region body
PF: predicated region fallthrough
CT: control target
= control target key end

     0   :  { %s6674_s0 = inlined_call_operand.vmem [shape: bf16[128,256], index: 0, kind: input, shape index: {}]   ;;  %s6675_s1 = inlined_call_operand.vmem [shape: bf16[256,128], index: 1, kind: input, shape index: {}]   ;;  %s6676_s2 = inlined_call_operand.vmem [shape: f32[8,128], index: 2, kind: input, shape index: {}]   ;;  %s6677_s3 = inlined_call_operand.vmem [shape: bf16[9,32,128], index: 3, kind: input, shape index: {}]   ;;  %s6678_s4 = inlined_call_operand.vmem [shape: bf16[9,128,128], index: 4, kind: input, shape index: {}]   ;;  %s6679_s5 = inlined_call_operand.vmem [shape: bf16[9,8,32], index: 5, kind: input, shape index: {}]   ;;  %s6680_s6 = inlined_call_operand.vmem [shape: bf16[9,128,128], index: 6, kind: input, shape index: {}]   ;;  %s6681_s7 = inlined_call_operand.vmem [shape: bf16[128,128], index: 7, kind: input, shape index: {}]   ;;  %s6682_s8 = inlined_call_operand.hbm [shape: f32[8,128], index: 8, kind: output, shape index: {0}]   ;;  %s6683_s9 = inlined_call_operand.vmem [shape: f32[8,128], index: 9, kind: output, shape index: {1}]  }
   0x1   :  { %v5288_v0 = vld [vmem:[%s6675_s1 + $0x78] sm:$0xff]   ;;  %v5290_v2 = vld [vmem:[%s6675_s1 + $0x70] sm:$0xff]   ;;  %v5292_v4 = vld [vmem:[%s6675_s1 + $0x68] sm:$0xff]  }
   0x2   :  { %v5289_v1 = vld [vmem:[%s6675_s1 + $0x38] sm:$0xff]   ;;  %4292 = vmatprep.subr.bf16.mxu0 %v5288_v0  ;;  %v5291_v3 = vld [vmem:[%s6675_s1 + $0x30] sm:$0xff]   ;;  %v5293_v5 = vld [vmem:[%s6675_s1 + $0x28] sm:$0xff]  }
   0x3   :  { %4293 = vmatpush3.bf16.msra.mxu0 %v5289_v1  ;;  %v5294_v6 = vld [vmem:[%s6675_s1 + $0x60] sm:$0xff]   ;;  %v5296_v8 = vld [vmem:[%s6675_s1 + $0x58] sm:$0xff]   ;;  %v5298_v10 = vld [vmem:[%s6675_s1 + $0x50] sm:$0xff]  }
   0x4   :  { %4294 = vmatprep.subr.bf16.mxu0 %v5290_v2  ;;  %v5295_v7 = vld [vmem:[%s6675_s1 + $0x20] sm:$0xff]   ;;  %v5297_v9 = vld [vmem:[%s6675_s1 + $0x18] sm:$0xff]   ;;  %v5299_v12 = vld [vmem:[%s6675_s1 + $0x10] sm:$0xff]  }
   0x5   :  { %v5306_v11 = vld [vmem:[%s6674_s0 + $0x4] ss:$8 sps:$4 sm:$0xff]   ;;  %v5304_v17 = vld [vmem:[%s6674_s0] ss:$8 sps:$4 sm:$0xff]   ;;  %v5307_v18 = vld [vmem:[%s6674_s0 + $0x14] ss:$8 sps:$4 sm:$0xff]  }
   0x6   :  { %290 = vmatprep.mubr.bf16.mxu0 %v5306_v11  ;;  %v5300_v13 = vld [vmem:[%s6675_s1 + $0x48] sm:$0xff]   ;;  %v5302_v15 = vld [vmem:[%s6675_s1 + $0x40] sm:$0xff]   ;;  %v5309_v19 = vld [vmem:[%s6674_s0 + $0x10] ss:$8 sps:$4 sm:$0xff]  }
   0x7   :  { %4295 = vmatpush3.bf16.msra.mxu0 %v5291_v3  ;;  %v5301_v14 = vld [vmem:[%s6675_s1 + $0x8] sm:$0xff]   ;;  %v5303_v16 = vld [vmem:[%s6675_s1] sm:$0xff]   ;;  %v5313_v22 = vld [vmem:[%s6674_s0 + $0x34] ss:$8 sps:$4 sm:$0xff]  }
   0x8   :  { %4296 = vmatprep.subr.bf16.mxu0 %v5292_v4  ;;  %v5310_v20 = vld [vmem:[%s6674_s0 + $0x24] ss:$8 sps:$4 sm:$0xff]   ;;  %v5312_v21 = vld [vmem:[%s6674_s0 + $0x20] ss:$8 sps:$4 sm:$0xff]   ;;  %v5315_v23 = vld [vmem:[%s6674_s0 + $0x30] ss:$8 sps:$4 sm:$0xff]  }
   0x9   :  { %v5316_v24 = vld [vmem:[%s6674_s0 + $0x44] ss:$8 sps:$4 sm:$0xff]   ;;  %v5318_v25 = vld [vmem:[%s6674_s0 + $0x40] ss:$8 sps:$4 sm:$0xff]   ;;  %v5319_v26 = vld [vmem:[%s6674_s0 + $0x54] ss:$8 sps:$4 sm:$0xff]  }
   0xa   :  { %v5321_v27 = vld [vmem:[%s6674_s0 + $0x50] ss:$8 sps:$4 sm:$0xff]   ;;  %v5322_v28 = vld [vmem:[%s6674_s0 + $0x64] ss:$8 sps:$4 sm:$0xff]   ;;  %v5324_v29 = vld [vmem:[%s6674_s0 + $0x60] ss:$8 sps:$4 sm:$0xff]  }
   0xb   :  { %4297 = vmatpush3.bf16.msra.mxu0 %v5293_v5  ;;  %v5325_v30 = vld [vmem:[%s6674_s0 + $0x74] ss:$8 sps:$4 sm:$0xff]   ;;  %v5327_v31 = vld [vmem:[%s6674_s0 + $0x70] ss:$8 sps:$4 sm:$0xff]  }
   0xc   :  { %4298 = vmatprep.subr.bf16.mxu0 %v5294_v6 }
   0xf   :  { %4299 = vmatpush3.bf16.msra.mxu0 %v5295_v7 }
  0x10   :  { %4300 = vmatprep.subr.bf16.mxu0 %v5296_v8 }
  0x13   :  { %4301 = vmatpush3.bf16.msra.mxu0 %v5297_v9 }
  0x14   :  { %4302 = vmatprep.subr.bf16.mxu0 %v5298_v10 }
  0x17   :  { %4303 = vmatpush3.bf16.msra.mxu0 %v5299_v12 }
  0x18   :  { %4304 = vmatprep.subr.bf16.mxu0 %v5300_v13 }
  0x1b   :  { %4305 = vmatpush3.bf16.msra.mxu0 %v5301_v14 }
  0x1c   :  { %4306 = vmatprep.subr.bf16.mxu0 %v5302_v15 }
  0x1f   :  { %4307 = vmatpush3.bf16.msra.mxu0 %v5303_v16 }
  0x22   :  { %291 = vmatmul.mubr.bf16.vlgmr.msra.gmra.mxu0 %v5304_v17 }
  0x23   :  { %298 = vmatprep.mubr.bf16.mxu0 %v5307_v18 }
  0x2a   :  { %299 = vmatmul.mubr.bf16.gmra.mxu0 %v5309_v19 }
  0x2b   :  { %306 = vmatprep.mubr.bf16.mxu0 %v5310_v20 }
  0x32   :  { %307 = vmatmul.mubr.bf16.gmra.mxu0 %v5312_v21 }
  0x33   :  { %314 = vmatprep.mubr.bf16.mxu0 %v5313_v22 }
  0x3a   :  { %315 = vmatmul.mubr.bf16.gmra.mxu0 %v5315_v23 }
  0x3b   :  { %322 = vmatprep.mubr.bf16.mxu0 %v5316_v24 }
  0x42   :  { %323 = vmatmul.mubr.bf16.gmra.mxu0 %v5318_v25 }
  0x43   :  { %330 = vmatprep.mubr.bf16.mxu0 %v5319_v26 }
  0x4a   :  { %331 = vmatmul.mubr.bf16.gmra.mxu0 %v5321_v27 }
  0x4b   :  { %338 = vmatprep.mubr.bf16.mxu0 %v5322_v28 }
  0x52   :  { %339 = vmatmul.mubr.bf16.gmra.mxu0 %v5324_v29 }
  0x53   :  { %346 = vmatprep.mubr.bf16.mxu0 %v5325_v30 }
  0x5a   :  { %347 = vmatmul.mubr.bf16.gmra.mxu0 %v5327_v31 }
  0x5b   :  { %15 = vsyncpa [#allocation3], 0  ;;  %v5328_v38 = vld [vmem:[%s6678_s4 + $0x78] sm:$0xff]   ;;  %v5329_v41 = vld [vmem:[%s6678_s4 + $0x70] sm:$0xff]   ;;  %vm5530_vm0 = vmmov 0   ;;  %vm2226_vm1 = vcmask 261120  }
  0x5c   :  { %4693 = vmatprep.subr.bf16.mxu0 %v5328_v38  ;;  %v5330_v44 = vld [vmem:[%s6678_s4 + $0x68] sm:$0xff]   ;;  %v5331_v47 = vld [vmem:[%s6678_s4 + $0x60] sm:$0xff]   ;;  %v5332_v50 = vld [vmem:[%s6678_s4 + $0x58] sm:$0xff]  }
  0x5d   :  { %4694 = vmatpush3.bf16.msra.mxu0 %v5328_v38  ;;  %v5333_v53 = vld [vmem:[%s6678_s4 + $0x50] sm:$0xff]   ;;  %v5334_v57 = vld [vmem:[%s6678_s4 + $0x48] sm:$0xff]   ;;  %v5335_v0 = vld [vmem:[%s6678_s4 + $0x40] sm:$0xff]  }
  0x5e   :  { %4695 = vmatprep.subr.bf16.mxu0 %v5329_v41 }
  0x61   :  { %4696 = vmatpush3.bf16.msra.mxu0 %v5329_v41 }
  0x62   :  { %4697 = vmatprep.subr.bf16.mxu0 %v5330_v44 }
  0x65   :  { %4698 = vmatpush3.bf16.msra.mxu0 %v5330_v44 }
  0x66   :  { %4699 = vmatprep.subr.bf16.mxu0 %v5331_v47 }
  0x69   :  { %4700 = vmatpush3.bf16.msra.mxu0 %v5331_v47 }
  0x6a   :  { %4701 = vmatprep.subr.bf16.mxu0 %v5332_v50 }
  0x6d   :  { %4702 = vmatpush3.bf16.msra.mxu0 %v5332_v50 }
  0x6e   :  { %4703 = vmatprep.subr.bf16.mxu0 %v5333_v53 }
  0x71   :  { %4704 = vmatpush3.bf16.msra.mxu0 %v5333_v53 }
  0x72   :  { %4705 = vmatprep.subr.bf16.mxu0 %v5334_v57 }
  0x75   :  { %4706 = vmatpush3.bf16.msra.mxu0 %v5334_v57 }
  0x76   :  { %4707 = vmatprep.subr.bf16.mxu0 %v5335_v0 }
  0x79   :  { %4708 = vmatpush3.bf16.msra.mxu0 %v5335_v0 }
  0xe2   :  { %v4308_v32 = vpop.f32.mrf.mxu0 }
  0xe4   :  { %v4309_v33 = vpop.f32.mrf.mxu0 }
  0xe5   :  { %v5701_v58 = vadd.f32 %v4309_v33, %v4308_v32 }
  0xe6   :  { %v4311_v34 = vpop.f32.mrf.mxu0 }
  0xe8   :  { %v4312_v35 = vpop.f32.mrf.mxu0 }
  0xe9   :  { %v5696_v55 = vadd.f32 %v4312_v35, %v4311_v34 }
  0xea   :  { %v4314_v36 = vpop.f32.mrf.mxu0 }
  0xeb   :  { %v355_v61 = vadd.f32 %v5696_v55, %v5701_v58 }
  0xec   :  { %v4315_v37 = vpop.f32.mrf.mxu0 }
  0xed   :  { %v5703_v59 = vadd.f32 %v4315_v37, %v4314_v36 }
  0xee   :  { %v4317_v39 = vpop.f32.mrf.mxu0 }
  0xef   :  { %v356_v1 = vadd.f32 %v5703_v59, %v355_v61 }
  0xf0   :  { %v4318_v40 = vpop.f32.mrf.mxu0 }
  0xf1   :  { %v5707_v62 = vadd.f32 %v4318_v40, %v4317_v39 }
  0xf2   :  { %v4320_v42 = vpop.f32.mrf.mxu0 }
  0xf3   :  { %v357_v4 = vadd.f32 %v5707_v62, %v356_v1 }
  0xf4   :  { %v4321_v43 = vpop.f32.mrf.mxu0 }
  0xf5   :  { %v5713_v2 = vadd.f32 %v4321_v43, %v4320_v42  ;;  %v5336_v42 = vld [vmem:[%s6677_s3] sm:$0xff]  }
  0xf6   :  { %v4323_v45 = vpop.f32.mrf.mxu0  ;;  %4669 = vmatprep.mubr.bf16.mxu1 %v5336_v42 }
  0xf7   :  { %v358_v7 = vadd.f32 %v5713_v2, %v357_v4 }
  0xf8   :  { %v4324_v46 = vpop.f32.mrf.mxu0 }
  0xf9   :  { %v5716_v5 = vadd.f32 %v4324_v46, %v4323_v45 }
  0xfa   :  { %v4326_v48 = vpop.f32.mrf.mxu0 }
  0xfb   :  { %v359_v10 = vadd.f32 %v5716_v5, %v358_v7 }
  0xfc   :  { %v4327_v49 = vpop.f32.mrf.mxu0 }
  0xfd   :  { %v5719_v8 = vadd.f32 %v4327_v49, %v4326_v48 }
  0xfe   :  { %v4329_v51 = vpop.f32.mrf.mxu0 }
  0xff   :  { %v360_v13 = vadd.f32 %v5719_v8, %v359_v10 }
 0x100   :  { %v4330_v52 = vpop.f32.mrf.mxu0 }
 0x101   :  { %v5722_v11 = vadd.f32 %v4330_v52, %v4329_v51 }
 0x102   :  { %v4332_v54 = vpop.f32.mrf.mxu0 }
 0x103   :  { %v361_v16 = vadd.f32 %v5722_v11, %v360_v13 }
 0x104   :  { %v4333_v56 = vpop.f32.mrf.mxu0 }
 0x105   :  { %v5725_v14 = vadd.f32 %v4333_v56, %v4332_v54 }
 0x106   :  { %v4335_v60 = vpop.f32.mrf.mxu0 }
 0x107   :  { %v362_v19 = vadd.f32 %v5725_v14, %v361_v16 }
 0x108   :  { %v4336_v63 = vpop.f32.mrf.mxu0 }
 0x109   :  { %v5728_v17 = vadd.f32 %v4336_v63, %v4335_v60 }
 0x10a   :  { %v4338_v3 = vpop.f32.mrf.mxu0 }
 0x10b   :  { %v363_v22 = vadd.f32 %v5728_v17, %v362_v19 }
 0x10c   :  { %v4339_v6 = vpop.f32.mrf.mxu0 }
 0x10d   :  { %v5731_v20 = vadd.f32 %v4339_v6, %v4338_v3 }
 0x10e   :  { %v4341_v9 = vpop.f32.mrf.mxu0 }
 0x10f   :  { %v364_v25 = vadd.f32 %v5731_v20, %v363_v22 }
 0x110   :  { %v4342_v12 = vpop.f32.mrf.mxu0 }
 0x111   :  { %v5734_v23 = vadd.f32 %v4342_v12, %v4341_v9 }
 0x112   :  { %v4344_v15 = vpop.f32.mrf.mxu0 }
 0x113   :  { %v365_v28 = vadd.f32 %v5734_v23, %v364_v25 }
 0x114   :  { %v4345_v18 = vpop.f32.mrf.mxu0 }
 0x115   :  { %v5737_v26 = vadd.f32 %v4345_v18, %v4344_v15 }
 0x116   :  { %v4347_v21 = vpop.f32.mrf.mxu0 }
 0x117   :  { %v366_v31 = vadd.f32 %v5737_v26, %v365_v28 }
 0x118   :  { %v4348_v24 = vpop.f32.mrf.mxu0 }
 0x119   :  { %v5740_v29 = vadd.f32 %v4348_v24, %v4347_v21 }
 0x11a   :  { %v4350_v27 = vpop.f32.mrf.mxu0 }
 0x11b   :  { %v367_v34 = vadd.f32 %v5740_v29, %v366_v31 }
 0x11c   :  { %v4351_v30 = vpop.f32.mrf.mxu0 }
 0x11d   :  { %v5743_v32 = vadd.f32 %v4351_v30, %v4350_v27 }
 0x11e   :  { %v4353_v33 = vpop.f32.mrf.mxu0 }
 0x11f   :  { %v368_v36 = vadd.f32 %v5743_v32, %v367_v34 }
 0x120   :  { %v4354_v35 = vpop.f32.mrf.mxu0 }
 0x121   :  { %v5747_v37 = vadd.f32 %v4354_v35, %v4353_v33 }
 0x123   :  { %v369_v38 = vadd.f32 %v5747_v37, %v368_v36 }
 0x125   :  { %v370_v39 = vrot.slane %v369_v38, 4 }
 0x127   :  { %v371_v40 = vadd.f32 %v370_v39, %v369_v38 }
 0x129   :  { %v372_v41 = vrot.slane %v371_v40, 2 }
 0x12b   :  { %v373_v43 = vadd.f32 %v372_v41, %v371_v40 }
 0x12d   :  { %v374_v44 = vrot.slane %v373_v43, 1 }
 0x12f   :  { %v375_v45 = vadd.f32 %v374_v44, %v373_v43 }
 0x131   :  { %v376_v46 = vmul.f32 0.0078125, %v375_v45 }
 0x133   :  { %v377_v47 = vsub.f32 %v5701_v58, %v376_v46  ;;  %v378_v48 = vsub.f32 %v5696_v55, %v376_v46  ;;  %v379_v49 = vsub.f32 %v5703_v59, %v376_v46  ;;  %v380_v52 = vsub.f32 %v5707_v62, %v376_v46 }
 0x134   :  { %v381_v53 = vsub.f32 %v5713_v2, %v376_v46  ;;  %v382_v57 = vsub.f32 %v5716_v5, %v376_v46  ;;  %v383_v63 = vsub.f32 %v5719_v8, %v376_v46  ;;  %v384_v3 = vsub.f32 %v5722_v11, %v376_v46 }
 0x135   :  { %v393_v50 = vmul.f32 %v377_v47, %v377_v47  ;;  %v394_v51 = vmul.f32 %v378_v48, %v378_v48  ;;  %v395_v54 = vmul.f32 %v379_v49, %v379_v49  ;;  %v396_v60 = vmul.f32 %v380_v52, %v380_v52 }
 0x136   :  { %v397_v0 = vmul.f32 %v381_v53, %v381_v53  ;;  %v398_v4 = vmul.f32 %v382_v57, %v382_v57  ;;  %v385_v7 = vsub.f32 %v5725_v14, %v376_v46  ;;  %v399_v9 = vmul.f32 %v383_v63, %v383_v63  ;;  %v33_v57 = vld [vmem:[%s6676_s2] sm:$0xff] }
 0x137   :  { %v409_v56 = vadd.f32 %v394_v51, %v393_v50  ;;  %v386_v12 = vsub.f32 %v5728_v17, %v376_v46  ;;  %v400_v13 = vmul.f32 %v384_v3, %v384_v3  ;;  %v387_v16 = vsub.f32 %v5731_v20, %v376_v46 }
 0x138   :  { %v401_v18 = vmul.f32 %v385_v7, %v385_v7  ;;  %v388_v21 = vsub.f32 %v5734_v23, %v376_v46  ;;  %v389_v25 = vsub.f32 %v5737_v26, %v376_v46  ;;  %v390_v30 = vsub.f32 %v5740_v29, %v376_v46 }
 0x139   :  { %v410_v61 = vadd.f32 %v409_v56, %v395_v54  ;;  %v402_v22 = vmul.f32 %v386_v12, %v386_v12  ;;  %v403_v27 = vmul.f32 %v387_v16, %v387_v16  ;;  %v391_v34 = vsub.f32 %v5743_v32, %v376_v46 }
 0x13a   :  { %v404_v31 = vmul.f32 %v388_v21, %v388_v21  ;;  %v405_v35 = vmul.f32 %v389_v25, %v389_v25  ;;  %v392_v38 = vsub.f32 %v5747_v37, %v376_v46  ;;  %v406_v39 = vmul.f32 %v390_v30, %v390_v30 }
 0x13b   :  { %v411_v1 = vadd.f32 %v410_v61, %v396_v60  ;;  %v407_v41 = vmul.f32 %v391_v34, %v391_v34  ;;  %v439_v56 = vlaneseq }
 0x13c   :  { %v408_v43 = vmul.f32 %v392_v38, %v392_v38 }
 0x13d   :  { %v412_v6 = vadd.f32 %v411_v1, %v397_v0  ;;  %v5772_v61 = vshrl.u32 %v439_v56, 7 }
 0x13f   :  { %v413_v10 = vadd.f32 %v412_v6, %v398_v4  ;;  %v441_v1 = vsub.s32 0, %v5772_v61  ;;  %v461_v4 = vsub.s32 1, %v5772_v61 }
 0x141   :  { %v414_v15 = vadd.f32 %v413_v10, %v399_v9 }
 0x143   :  { %v415_v19 = vadd.f32 %v414_v15, %v400_v13 }
 0x145   :  { %v416_v24 = vadd.f32 %v415_v19, %v401_v18 }
 0x147   :  { %v417_v28 = vadd.f32 %v416_v24, %v402_v22 }
 0x149   :  { %v418_v33 = vadd.f32 %v417_v28, %v403_v27 }
 0x14b   :  { %v419_v36 = vadd.f32 %v418_v33, %v404_v31 }
 0x14d   :  { %v420_v40 = vadd.f32 %v419_v36, %v405_v35 }
 0x14f   :  { %v421_v42 = vadd.f32 %v420_v40, %v406_v39 }
 0x151   :  { %v422_v44 = vadd.f32 %v421_v42, %v407_v41 }
 0x153   :  { %v423_v45 = vadd.f32 %v422_v44, %v408_v43 }
 0x155   :  { %v424_v47 = vrot.slane %v423_v45, 4 }
 0x157   :  { %v425_v48 = vadd.f32 %v424_v47, %v423_v45 }
 0x159   :  { %v426_v49 = vrot.slane %v425_v48, 2 }
 0x15b   :  { %v427_v50 = vadd.f32 %v426_v49, %v425_v48 }
 0x15d   :  { %v428_v51 = vrot.slane %v427_v50, 1 }
 0x15f   :  { %v429_v52 = vadd.f32 %v428_v51, %v427_v50 }
 0x161   :  { %v430_v53 = vmul.f32 0.0078125, %v429_v52 }
 0x163   :  { %v431_v54 = vadd.f32 1e-05, %v430_v53 }
 0x165   :  { %5498 = vrsqrt.f32 %v431_v54 }
 0x172   :  { %v5499_v60 = vpop.eup %5498 }
 0x173   :  { %v433_v63 = vmul.f32 %v5499_v60, %v33_v57 }
 0x175   :  { %v434_v0 = vmul.f32 %v433_v63, %v376_v46  ;;  %v442_v7 = vrot.slane %v433_v63, %v441_v1  ;;  %v5338_v1 = vld [vmem:[%s6677_s3 + $0x10] sm:$0xff]  }
 0x177   :  { %v436_v3 = vrot.slane %v434_v0, 7  ;;  %v455_v10 = vmul.f32 %v5737_v26, %v442_v7  ;;  %v456_v12 = vmul.f32 %v5740_v29, %v442_v7  ;;  %v457_v13 = vmul.f32 %v5743_v32, %v442_v7 }
 0x178   :  { %v458_v15 = vmul.f32 %v5747_v37, %v442_v7  ;;  %v453_v21 = vmul.f32 %v5731_v20, %v442_v7  ;;  %v454_v22 = vmul.f32 %v5734_v23, %v442_v7  ;;  %v451_v29 = vmul.f32 %v5725_v14, %v442_v7 }
 0x179   :  { %v438_v6 = vsub.f32 %v33_v57, %v436_v3  ;;  %v452_v32 = vmul.f32 %v5728_v17, %v442_v7  ;;  %v449_v23 = vmul.f32 %v5719_v8, %v442_v7  ;;  %v450_v14 = vmul.f32 %v5722_v11, %v442_v7  ;;  %v5340_v3 = vld [vmem:[%s6678_s4 + $0x38] sm:$0xff]  }
 0x17a   :  { %v447_v41 = vmul.f32 %v5713_v2, %v442_v7  ;;  %v448_v42 = vmul.f32 %v5716_v5, %v442_v7  ;;  %v445_v47 = vmul.f32 %v5703_v59, %v442_v7  ;;  %v446_v48 = vmul.f32 %v5707_v62, %v442_v7 }
 0x17b   :  { %v462_v9 = vrot.slane %v438_v6, %v461_v4  ;;  %v443_v52 = vmul.f32 %v5701_v58, %v442_v7  ;;  %v444_v53 = vmul.f32 %v5696_v55, %v442_v7  ;;  %v5337_v58 = vld [vmem:[%s6677_s3 + $0x8] sm:$0xff]   ;;  %v5339_v4 = vld [vmem:[%s6677_s3 + $0x18] sm:$0xff]   ;;  %v5341_v6 = vld [vmem:[%s6678_s4 + $0x30] sm:$0xff]  }
 0x17c   :  { %v5342_v7 = vld [vmem:[%s6678_s4 + $0x28] sm:$0xff]  }
 0x17d   :  { %v475_v16 = vadd.f32 %v462_v9, %v455_v10  ;;  %v476_v18 = vadd.f32 %v462_v9, %v456_v12  ;;  %v477_v19 = vadd.f32 %v462_v9, %v457_v13  ;;  %v478_v46 = vadd.f32 %v462_v9, %v458_v15  ;;  %v5344_v10 = vld [vmem:[%s6678_s4 + $0x18] sm:$0xff]   ;;  %v5345_v12 = vld [vmem:[%s6678_s4 + $0x10] sm:$0xff]   ;;  %v5346_v13 = vld [vmem:[%s6678_s4 + $0x8] sm:$0xff]  }
 0x17e   :  { %v473_v24 = vadd.f32 %v462_v9, %v453_v21  ;;  %v474_v25 = vadd.f32 %v462_v9, %v454_v22  ;;  %v471_v37 = vadd.f32 %v462_v9, %v451_v29  ;;  %v472_v33 = vadd.f32 %v462_v9, %v452_v32  ;;  %v5347_v15 = vld [vmem:[%s6678_s4] sm:$0xff]   ;;  %v5349_v32 = vld [vmem:[%s6677_s3 + $0x28] sm:$0xff]  }
 0x17f   :  { %v491_v27 = vmax.f32 %v475_v16, 0.0  ;;  %v492_v28 = vmax.f32 %v476_v18, 0.0  ;;  %v493_v30 = vmax.f32 %v477_v19, 0.0  ;;  %v494_v26 = vmax.f32 %v478_v46, 0.0 }
 0x180   :  { %v489_v34 = vmax.f32 %v473_v24, 0.0  ;;  %v490_v35 = vmax.f32 %v474_v25, 0.0  ;;  %v469_v17 = vadd.f32 %v462_v9, %v449_v23  ;;  %v470_v36 = vadd.f32 %v462_v9, %v450_v14  ;;  %v5361_v23 = vld [vmem:[%s6678_s4 + $0xb0] sm:$0xff]   ;;  %v5362_v14 = vld [vmem:[%s6678_s4 + $0xa8] sm:$0xff]  }
 0x181   :  { %v5784_v31 = vpack.c.bf16 %v494_v26, %v493_v30  ;;  %v5788_v20 = vpack.c.bf16 %v492_v28, %v491_v27  ;;  %v487_v38 = vmax.f32 %v471_v37, 0.0  ;;  %v488_v39 = vmax.f32 %v472_v33, 0.0  ;;  %v5348_v26 = vld [vmem:[%s6677_s3 + $0x20] sm:$0xff]   ;;  %v5350_v37 = vld [vmem:[%s6677_s3 + $0x30] sm:$0xff]   ;;  %v5351_v33 = vld [vmem:[%s6677_s3 + $0x38] sm:$0xff]  }
 0x182   :  { %v5794_v40 = vpack.c.bf16 %v490_v35, %v489_v34  ;;  %v467_v8 = vadd.f32 %v462_v9, %v447_v41  ;;  %v468_v43 = vadd.f32 %v462_v9, %v448_v42  ;;  %v485_v44 = vmax.f32 %v469_v17, 0.0  ;;  %v5352_v34 = vld [vmem:[%s6677_s3 + $0x40] sm:$0xff]   ;;  %v5360_v35 = vld [vmem:[%s6678_s4 + $0xb8] sm:$0xff]   ;;  %v5354_v41 = vld [vmem:[%s6677_s3 + $0x50] sm:$0xff]  }
 0x183   :  { %4653 = vmatprep.subr.bf16.mxu1 %v5784_v31  ;;  %4733 = vmatprep.subr.bf16.mxu0 %v5784_v31  ;;  %v486_v11 = vmax.f32 %v470_v36, 0.0  ;;  %v5800_v45 = vpack.c.bf16 %v488_v39, %v487_v38  ;;  %v465_v2 = vadd.f32 %v462_v9, %v445_v47  ;;  %v466_v49 = vadd.f32 %v462_v9, %v446_v48  ;;  %v5363_v17 = vld [vmem:[%s6678_s4 + $0xa0] sm:$0xff]   ;;  %v5364_v36 = vld [vmem:[%s6678_s4 + $0x98] sm:$0xff]   ;;  %v5353_v38 = vld [vmem:[%s6677_s3 + $0x48] sm:$0xff]  }
 0x184   :  { %4654 = vmatpush3.bf16.msra.mxu1 %v5784_v31  ;;  %v483_v50 = vmax.f32 %v467_v8, 0.0  ;;  %v484_v5 = vmax.f32 %v468_v43, 0.0  ;;  %v463_v59 = vadd.f32 %v462_v9, %v443_v52  ;;  %v464_v54 = vadd.f32 %v462_v9, %v444_v53  ;;  %v5343_v9 = vld [vmem:[%s6678_s4 + $0x20] sm:$0xff]   ;;  %v5365_v39 = vld [vmem:[%s6678_s4 + $0x90] sm:$0xff]   ;;  %v5368_v42 = vld [vmem:[%s6678_s4 + $0x88] sm:$0xff]  }
 0x185   :  { %4655 = vmatprep.subr.bf16.mxu1 %v5788_v20  ;;  %v5806_v51 = vpack.c.bf16 %v486_v11, %v485_v44  ;;  %v481_v56 = vmax.f32 %v465_v2, 0.0  ;;  %v482_v62 = vmax.f32 %v466_v49, 0.0  ;;  %v5369_v8 = vld [vmem:[%s6678_s4 + $0x80] sm:$0xff]   ;;  %v5974_v43 = vld [vmem:[%s6678_s4 + $0xf8] sm:$0xff]   ;;  %v5357_v47 = vld [vmem:[%s6677_s3 + $0x68] sm:$0xff]  }
 0x186   :  { %v5812_v57 = vpack.c.bf16 %v484_v5, %v483_v50  ;;  %v479_v60 = vmax.f32 %v463_v59, 0.0  ;;  %v480_v63 = vmax.f32 %v464_v54, 0.0  ;;  %v5355_v44 = vld [vmem:[%s6677_s3 + $0x58] sm:$0xff]   ;;  %v5356_v11 = vld [vmem:[%s6677_s3 + $0x60] sm:$0xff]   ;;  %v5358_v48 = vld [vmem:[%s6677_s3 + $0x70] sm:$0xff]  }
 0x187   :  { %v5816_v0 = vpack.c.bf16 %v482_v62, %v481_v56  ;;  %v5359_v2 = vld [vmem:[%s6677_s3 + $0x78] sm:$0xff]   ;;  %v5366_v49 = vld [vmem:[%s6677_s3 + $0x80] sm:$0xff]   ;;  %v5371_v56 = vld [vmem:[%s6678_s4 + $0xf0] sm:$0xff]  }
 0x188   :  { %4656 = vmatpush3.bf16.msra.mxu1 %v5788_v20  ;;  %v5820_v55 = vpack.c.bf16 %v480_v63, %v479_v60  ;;  %v5372_v62 = vld [vmem:[%s6678_s4 + $0xe8] sm:$0xff]   ;;  %v5374_v60 = vld [vmem:[%s6678_s4 + $0xd8] sm:$0xff]   ;;  %v5375_v63 = vld [vmem:[%s6678_s4 + $0xd0] sm:$0xff]  }
 0x189   :  { %4657 = vmatprep.subr.bf16.mxu1 %v5794_v40 }
 0x18c   :  { %4658 = vmatpush3.bf16.msra.mxu1 %v5794_v40 }
 0x18d   :  { %4659 = vmatprep.subr.bf16.mxu1 %v5800_v45 }
 0x190   :  { %4660 = vmatpush3.bf16.msra.mxu1 %v5800_v45 }
 0x191   :  { %4661 = vmatprep.subr.bf16.mxu1 %v5806_v51 }
 0x194   :  { %4662 = vmatpush3.bf16.msra.mxu1 %v5806_v51 }
 0x195   :  { %4663 = vmatprep.subr.bf16.mxu1 %v5812_v57 }
 0x198   :  { %4664 = vmatpush3.bf16.msra.mxu1 %v5812_v57 }
 0x199   :  { %4665 = vmatprep.subr.bf16.mxu1 %v5816_v0 }
 0x19c   :  { %4666 = vmatpush3.bf16.msra.mxu1 %v5816_v0 }
 0x19d   :  { %4667 = vmatprep.subr.bf16.mxu1 %v5820_v55 }
 0x1a0   :  { %4668 = vmatpush3.bf16.msra.mxu1 %v5820_v55 }
 0x1a1   :  { %4673 = vmatprep.subr.bf16.mxu1 %v5784_v31 }
 0x1a3   :  { %4670 = vmatmul.mubr.bf16.vlgmr.msra.gmra.mxu1 %v5337_v58  ;;  %v5377_v58 = vld [vmem:[%s6678_s4 + $0xc0] sm:$0xff]  }
 0x1a4   :  { %4674 = vmatpush3.bf16.msra.mxu1 %v5784_v31  ;;  %4689 = vmatprep.mubr.bf16.mxu1 %v5338_v1 }
 0x1a5   :  { %4675 = vmatprep.subr.bf16.mxu1 %v5788_v20 }
 0x1a8   :  { %4676 = vmatpush3.bf16.msra.mxu1 %v5788_v20 }
 0x1a9   :  { %4677 = vmatprep.subr.bf16.mxu1 %v5794_v40 }
 0x1ac   :  { %4678 = vmatpush3.bf16.msra.mxu1 %v5794_v40 }
 0x1ad   :  { %4679 = vmatprep.subr.bf16.mxu1 %v5800_v45 }
 0x1b0   :  { %4680 = vmatpush3.bf16.msra.mxu1 %v5800_v45 }
 0x1b1   :  { %4681 = vmatprep.subr.bf16.mxu1 %v5806_v51 }
 0x1b4   :  { %4682 = vmatpush3.bf16.msra.mxu1 %v5806_v51 }
 0x1b5   :  { %4683 = vmatprep.subr.bf16.mxu1 %v5812_v57 }
 0x1b8   :  { %4684 = vmatpush3.bf16.msra.mxu1 %v5812_v57 }
 0x1b9   :  { %4685 = vmatprep.subr.bf16.mxu1 %v5816_v0 }
 0x1bc   :  { %4686 = vmatpush3.bf16.msra.mxu1 %v5816_v0 }
 0x1bd   :  { %4687 = vmatprep.subr.bf16.mxu1 %v5820_v55 }
 0x1c0   :  { %4688 = vmatpush3.bf16.msra.mxu1 %v5820_v55 }
 0x1c1   :  { %4713 = vmatprep.subr.bf16.mxu1 %v5340_v3 }
 0x1c3   :  { %4690 = vmatmul.mubr.bf16.vlgmr.msra.gmra.mxu1 %v5339_v4  ;;  %v5378_v4 = vld [vmem:[%s6678_s4 + $0x138] sm:$0xff]  }
 0x1c4   :  { %4714 = vmatpush3.bf16.msra.mxu1 %v5340_v3 }
 0x1c5   :  { %4715 = vmatprep.subr.bf16.mxu1 %v5341_v6 }
 0x1c8   :  { %4716 = vmatpush3.bf16.msra.mxu1 %v5341_v6 }
 0x1c9   :  { %4717 = vmatprep.subr.bf16.mxu1 %v5342_v7 }
 0x1cc   :  { %4718 = vmatpush3.bf16.msra.mxu1 %v5342_v7 }
 0x1cd   :  { %4719 = vmatprep.subr.bf16.mxu1 %v5343_v9 }
 0x1d0   :  { %4720 = vmatpush3.bf16.msra.mxu1 %v5343_v9 }
 0x1d1   :  { %4721 = vmatprep.subr.bf16.mxu1 %v5344_v10 }
 0x1d4   :  { %4722 = vmatpush3.bf16.msra.mxu1 %v5344_v10  ;;  %v5379_v10 = vld [vmem:[%s6678_s4 + $0x130] sm:$0xff]  }
 0x1d5   :  { %4723 = vmatprep.subr.bf16.mxu1 %v5345_v12 }
 0x1d8   :  { %4724 = vmatpush3.bf16.msra.mxu1 %v5345_v12  ;;  %v5380_v12 = vld [vmem:[%s6678_s4 + $0x128] sm:$0xff]  }
 0x1d9   :  { %4725 = vmatprep.subr.bf16.mxu1 %v5346_v13 }
 0x1dc   :  { %4726 = vmatpush3.bf16.msra.mxu1 %v5346_v13  ;;  %v5381_v13 = vld [vmem:[%s6678_s4 + $0x120] sm:$0xff]  }
 0x1dd   :  { %4727 = vmatprep.subr.bf16.mxu1 %v5347_v15 }
 0x1e0   :  { %4728 = vmatpush3.bf16.msra.mxu1 %v5347_v15  ;;  %v5382_v15 = vld [vmem:[%s6678_s4 + $0x118] sm:$0xff]  }
 0x1e1   :  { %4753 = vmatprep.subr.bf16.mxu1 %v5360_v35 }
 0x263   :  { %v4671_v16 = vpop.f32.mrf.mxu1 }
 0x265   :  { %v553_v18 = vpop.f32.mrf.mxu1 }
 0x267   :  { %v4672_v19 = vpop.f32.mrf.mxu1 }
 0x268   :  { %v569_v22 = vpack.c.bf16 %v4672_v19, %v4671_v16  ;;  %v5383_v16 = vld [vmem:[%s6678_s4 + $0x110] sm:$0xff]  }
 0x269   :  { %v556_v46 = vpop.f32.mrf.mxu1 }
 0x26a   :  { %v568_v21 = vpack.c.bf16 %v556_v46, %v553_v18  ;;  %v5384_v18 = vld [vmem:[%s6678_s4 + $0x108] sm:$0xff]   ;;  %v5385_v46 = vld [vmem:[%s6678_s4 + $0x100] sm:$0xff]  }
 0x26c   :  { %4729 = vmatprep.mubr.bf16.mxu1 %v568_v21 }
 0x26d   :  { %4730 = vmatmul.mubr.bf16.vlgmr.msra.gmra.mxu1 %v569_v22 }
 0x26e   :  { %4754 = vmatpush3.bf16.msra.mxu1 %v5360_v35  ;;  %v5393_v35 = vld [vmem:[%s6678_s4 + $0x140] sm:$0xff]  }
 0x26f   :  { %4755 = vmatprep.subr.bf16.mxu1 %v5361_v23 }
 0x272   :  { %4756 = vmatpush3.bf16.msra.mxu1 %v5361_v23 }
 0x273   :  { %4757 = vmatprep.subr.bf16.mxu1 %v5362_v14 }
 0x276   :  { %4758 = vmatpush3.bf16.msra.mxu1 %v5362_v14 }
 0x277   :  { %4759 = vmatprep.subr.bf16.mxu1 %v5363_v17 }
 0x27a   :  { %4760 = vmatpush3.bf16.msra.mxu1 %v5363_v17  ;;  %v5394_v17 = vld [vmem:[%s6678_s4 + $0x1b8] sm:$0xff]  }
 0x27b   :  { %4761 = vmatprep.subr.bf16.mxu1 %v5364_v36 }
 0x27e   :  { %4762 = vmatpush3.bf16.msra.mxu1 %v5364_v36 }
 0x27f   :  { %4763 = vmatprep.subr.bf16.mxu1 %v5365_v39 }
 0x282   :  { %4764 = vmatpush3.bf16.msra.mxu1 %v5365_v39 }
 0x283   :  { %v4691_v24 = vpop.f32.mrf.mxu1  ;;  %4765 = vmatprep.subr.bf16.mxu1 %v5368_v42 }
 0x285   :  { %v637_v25 = vpop.f32.mrf.mxu1 }
 0x286   :  { %4766 = vmatpush3.bf16.msra.mxu1 %v5368_v42  ;;  %v5396_v42 = vld [vmem:[%s6678_s4 + $0x1a8] sm:$0xff]  }
 0x287   :  { %v4692_v27 = vpop.f32.mrf.mxu1  ;;  %4767 = vmatprep.subr.bf16.mxu1 %v5369_v8 }
 0x288   :  { %v653_v29 = vpack.c.bf16 %v4692_v27, %v4691_v24  ;;  %v5386_v24 = vld [vmem:[%s6678_s4 + $0x178] sm:$0xff]  }
 0x289   :  { %v640_v28 = vpop.f32.mrf.mxu1 }
 0x28a   :  { %v652_v30 = vpack.c.bf16 %v640_v28, %v637_v25  ;;  %4768 = vmatpush3.bf16.msra.mxu1 %v5369_v8  ;;  %v5397_v8 = vld [vmem:[%s6678_s4 + $0x1a0] sm:$0xff]  }
 0x28b   :  { %4793 = vmatprep.subr.bf16.mxu1 %v5974_v43 }
 0x28c   :  { %4709 = vmatprep.mubr.bf16.mxu0 %v652_v30  ;;  %v5387_v30 = vld [vmem:[%s6678_s4 + $0x170] sm:$0xff]  }
 0x28d   :  { %4710 = vmatmul.mubr.bf16.vlgmr.msra.gmra.mxu0 %v653_v29  ;;  %v5389_v29 = vld [vmem:[%s6678_s4 + $0x160] sm:$0xff]  }
 0x28e   :  { %4734 = vmatpush3.bf16.msra.mxu0 %v5784_v31  ;;  %4749 = vmatprep.mubr.bf16.mxu0 %v5348_v26  ;;  %v5388_v26 = vld [vmem:[%s6678_s4 + $0x168] sm:$0xff]  }
 0x28f   :  { %4735 = vmatprep.subr.bf16.mxu0 %v5788_v20 }
 0x292   :  { %4736 = vmatpush3.bf16.msra.mxu0 %v5788_v20 }
 0x293   :  { %4737 = vmatprep.subr.bf16.mxu0 %v5794_v40 }
 0x296   :  { %4738 = vmatpush3.bf16.msra.mxu0 %v5794_v40 }
 0x297   :  { %4739 = vmatprep.subr.bf16.mxu0 %v5800_v45 }
 0x29a   :  { %4740 = vmatpush3.bf16.msra.mxu0 %v5800_v45 }
 0x29b   :  { %4741 = vmatprep.subr.bf16.mxu0 %v5806_v51 }
 0x29e   :  { %4742 = vmatpush3.bf16.msra.mxu0 %v5806_v51 }
 0x29f   :  { %4743 = vmatprep.subr.bf16.mxu0 %v5812_v57 }
 0x2a2   :  { %4744 = vmatpush3.bf16.msra.mxu0 %v5812_v57 }
 0x2a3   :  { %4745 = vmatprep.subr.bf16.mxu0 %v5816_v0 }
 0x2a6   :  { %4746 = vmatpush3.bf16.msra.mxu0 %v5816_v0 }
 0x2a7   :  { %4747 = vmatprep.subr.bf16.mxu0 %v5820_v55 }
 0x2aa   :  { %4748 = vmatpush3.bf16.msra.mxu0 %v5820_v55 }
 0x2ab   :  { %4773 = vmatprep.subr.bf16.mxu0 %v5784_v31 }
 0x2ad   :  { %4750 = vmatmul.mubr.bf16.vlgmr.msra.gmra.mxu0 %v5349_v32  ;;  %v5390_v32 = vld [vmem:[%s6678_s4 + $0x158] sm:$0xff]  }
 0x2ae   :  { %4774 = vmatpush3.bf16.msra.mxu0 %v5784_v31  ;;  %4789 = vmatprep.mubr.bf16.mxu0 %v5350_v37  ;;  %v5391_v37 = vld [vmem:[%s6678_s4 + $0x150] sm:$0xff]  }
 0x2af   :  { %4775 = vmatprep.subr.bf16.mxu0 %v5788_v20 }
 0x2b2   :  { %4776 = vmatpush3.bf16.msra.mxu0 %v5788_v20 }
 0x2b3   :  { %4777 = vmatprep.subr.bf16.mxu0 %v5794_v40 }
 0x2b6   :  { %4778 = vmatpush3.bf16.msra.mxu0 %v5794_v40 }
 0x2b7   :  { %4779 = vmatprep.subr.bf16.mxu0 %v5800_v45 }
 0x2ba   :  { %4780 = vmatpush3.bf16.msra.mxu0 %v5800_v45 }
 0x2bb   :  { %4781 = vmatprep.subr.bf16.mxu0 %v5806_v51 }
 0x2be   :  { %4782 = vmatpush3.bf16.msra.mxu0 %v5806_v51 }
 0x2bf   :  { %4783 = vmatprep.subr.bf16.mxu0 %v5812_v57 }
 0x2c2   :  { %4784 = vmatpush3.bf16.msra.mxu0 %v5812_v57 }
 0x2c3   :  { %4785 = vmatprep.subr.bf16.mxu0 %v5816_v0 }
 0x2c6   :  { %4786 = vmatpush3.bf16.msra.mxu0 %v5816_v0 }
 0x2c7   :  { %4787 = vmatprep.subr.bf16.mxu0 %v5820_v55 }
 0x2ca   :  { %4788 = vmatpush3.bf16.msra.mxu0 %v5820_v55 }
 0x2cb   :  { %4813 = vmatprep.subr.bf16.mxu0 %v5784_v31 }
 0x2cd   :  { %4790 = vmatmul.mubr.bf16.vlgmr.msra.gmra.mxu0 %v5351_v33  ;;  %v5392_v33 = vld [vmem:[%s6678_s4 + $0x148] sm:$0xff]  }
 0x2ce   :  { %4814 = vmatpush3.bf16.msra.mxu0 %v5784_v31  ;;  %4829 = vmatprep.mubr.bf16.mxu0 %v5352_v34 }
 0x2cf   :  { %4815 = vmatprep.subr.bf16.mxu0 %v5788_v20 }
 0x2d2   :  { %4816 = vmatpush3.bf16.msra.mxu0 %v5788_v20 }
 0x2d3   :  { %4817 = vmatprep.subr.bf16.mxu0 %v5794_v40 }
 0x2d6   :  { %4818 = vmatpush3.bf16.msra.mxu0 %v5794_v40 }
 0x2d7   :  { %4819 = vmatprep.subr.bf16.mxu0 %v5800_v45 }
 0x2da   :  { %4820 = vmatpush3.bf16.msra.mxu0 %v5800_v45 }
 0x2db   :  { %4821 = vmatprep.subr.bf16.mxu0 %v5806_v51 }
 0x2de   :  { %4822 = vmatpush3.bf16.msra.mxu0 %v5806_v51 }
 0x2df   :  { %4823 = vmatprep.subr.bf16.mxu0 %v5812_v57 }
 0x2e2   :  { %4824 = vmatpush3.bf16.msra.mxu0 %v5812_v57 }
 0x2e3   :  { %4825 = vmatprep.subr.bf16.mxu0 %v5816_v0 }
 0x2e6   :  { %4826 = vmatpush3.bf16.msra.mxu0 %v5816_v0 }
 0x2e7   :  { %4827 = vmatprep.subr.bf16.mxu0 %v5820_v55 }
 0x2ea   :  { %4828 = vmatpush3.bf16.msra.mxu0 %v5820_v55 }
 0x2eb   :  { %4853 = vmatprep.subr.bf16.mxu0 %v5784_v31 }
 0x2ed   :  { %4830 = vmatmul.mubr.bf16.vlgmr.msra.gmra.mxu0 %v5353_v38 }
 0x2ee   :  { %4854 = vmatpush3.bf16.msra.mxu0 %v5784_v31  ;;  %4869 = vmatprep.mubr.bf16.mxu0 %v5354_v41  ;;  %v5395_v41 = vld [vmem:[%s6678_s4 + $0x1b0] sm:$0xff]  }
 0x2ef   :  { %4855 = vmatprep.subr.bf16.mxu0 %v5788_v20 }
 0x2f2   :  { %4856 = vmatpush3.bf16.msra.mxu0 %v5788_v20 }
 0x2f3   :  { %4857 = vmatprep.subr.bf16.mxu0 %v5794_v40 }
 0x2f6   :  { %4858 = vmatpush3.bf16.msra.mxu0 %v5794_v40 }
 0x2f7   :  { %4859 = vmatprep.subr.bf16.mxu0 %v5800_v45 }
 0x2fa   :  { %4860 = vmatpush3.bf16.msra.mxu0 %v5800_v45 }
 0x2fb   :  { %4861 = vmatprep.subr.bf16.mxu0 %v5806_v51 }
 0x2fe   :  { %4862 = vmatpush3.bf16.msra.mxu0 %v5806_v51 }
 0x2ff   :  { %4863 = vmatprep.subr.bf16.mxu0 %v5812_v57 }
 0x302   :  { %4864 = vmatpush3.bf16.msra.mxu0 %v5812_v57 }
 0x303   :  { %4865 = vmatprep.subr.bf16.mxu0 %v5816_v0 }
 0x306   :  { %4866 = vmatpush3.bf16.msra.mxu0 %v5816_v0 }
 0x307   :  { %4867 = vmatprep.subr.bf16.mxu0 %v5820_v55 }
 0x30a   :  { %4868 = vmatpush3.bf16.msra.mxu0 %v5820_v55 }
 0x30b   :  { %4893 = vmatprep.subr.bf16.mxu0 %v5784_v31 }
 0x30d   :  { %4870 = vmatmul.mubr.bf16.vlgmr.msra.gmra.mxu0 %v5355_v44  ;;  %v5399_v44 = vld [vmem:[%s6678_s4 + $0x190] sm:$0xff]  }
 0x30e   :  { %4894 = vmatpush3.bf16.msra.mxu0 %v5784_v31  ;;  %4909 = vmatprep.mubr.bf16.mxu0 %v5356_v11  ;;  %v5400_v11 = vld [vmem:[%s6678_s4 + $0x188] sm:$0xff]  }
 0x30f   :  { %4895 = vmatprep.subr.bf16.mxu0 %v5788_v20 }
 0x312   :  { %4896 = vmatpush3.bf16.msra.mxu0 %v5788_v20 }
 0x313   :  { %4897 = vmatprep.subr.bf16.mxu0 %v5794_v40 }
 0x316   :  { %4898 = vmatpush3.bf16.msra.mxu0 %v5794_v40 }
 0x317   :  { %4899 = vmatprep.subr.bf16.mxu0 %v5800_v45 }
 0x31a   :  { %4900 = vmatpush3.bf16.msra.mxu0 %v5800_v45 }
 0x31b   :  { %4901 = vmatprep.subr.bf16.mxu0 %v5806_v51 }
 0x31e   :  { %4902 = vmatpush3.bf16.msra.mxu0 %v5806_v51 }
 0x31f   :  { %4903 = vmatprep.subr.bf16.mxu0 %v5812_v57 }
 0x322   :  { %4904 = vmatpush3.bf16.msra.mxu0 %v5812_v57 }
 0x323   :  { %4905 = vmatprep.subr.bf16.mxu0 %v5816_v0 }
 0x326   :  { %4906 = vmatpush3.bf16.msra.mxu0 %v5816_v0 }
 0x327   :  { %4907 = vmatprep.subr.bf16.mxu0 %v5820_v55 }
 0x32a   :  { %4908 = vmatpush3.bf16.msra.mxu0 %v5820_v55 }
 0x32b   :  { %4933 = vmatprep.subr.bf16.mxu0 %v5784_v31 }
 0x32d   :  { %4910 = vmatmul.mubr.bf16.vlgmr.msra.gmra.mxu0 %v5357_v47 }
 0x32e   :  { %4934 = vmatpush3.bf16.msra.mxu0 %v5784_v31  ;;  %4949 = vmatprep.mubr.bf16.mxu0 %v5358_v48  ;;  %v5401_v48 = vld [vmem:[%s6678_s4 + $0x180] sm:$0xff]  }
 0x32f   :  { %4935 = vmatprep.subr.bf16.mxu0 %v5788_v20 }
 0x332   :  { %4936 = vmatpush3.bf16.msra.mxu0 %v5788_v20 }
 0x333   :  { %4937 = vmatprep.subr.bf16.mxu0 %v5794_v40 }
 0x336   :  { %4938 = vmatpush3.bf16.msra.mxu0 %v5794_v40 }
 0x337   :  { %4939 = vmatprep.subr.bf16.mxu0 %v5800_v45 }
 0x33a   :  { %4940 = vmatpush3.bf16.msra.mxu0 %v5800_v45 }
 0x33b   :  { %4941 = vmatprep.subr.bf16.mxu0 %v5806_v51 }
 0x33e   :  { %4942 = vmatpush3.bf16.msra.mxu0 %v5806_v51 }
 0x33f   :  { %4943 = vmatprep.subr.bf16.mxu0 %v5812_v57 }
 0x342   :  { %4944 = vmatpush3.bf16.msra.mxu0 %v5812_v57 }
 0x343   :  { %4945 = vmatprep.subr.bf16.mxu0 %v5816_v0 }
 0x346   :  { %4946 = vmatpush3.bf16.msra.mxu0 %v5816_v0 }
 0x347   :  { %4947 = vmatprep.subr.bf16.mxu0 %v5820_v55 }
 0x34a   :  { %4948 = vmatpush3.bf16.msra.mxu0 %v5820_v55 }
 0x34b   :  { %4973 = vmatprep.subr.bf16.mxu0 %v5784_v31 }
 0x34d   :  { %4950 = vmatmul.mubr.bf16.vlgmr.msra.gmra.mxu0 %v5359_v2  ;;  %v6048_v50 = vpop.f32.mrf.mxu0 }
 0x34e   :  { %4974 = vmatpush3.bf16.msra.mxu0 %v5784_v31  ;;  %4989 = vmatprep.mubr.bf16.mxu0 %v5366_v49 }
 0x34f   :  { %4975 = vmatprep.subr.bf16.mxu0 %v5788_v20  ;;  %v6052_v31 = vpop.f32.mrf.mxu0 }
 0x352   :  { %4976 = vmatpush3.bf16.msra.mxu0 %v5788_v20  ;;  %v6056_v20 = vpop.f32.mrf.mxu0 }
 0x353   :  { %4977 = vmatprep.subr.bf16.mxu0 %v5794_v40 }
 0x356   :  { %4978 = vmatpush3.bf16.msra.mxu0 %v5794_v40  ;;  %v5367_v40 = vld [vmem:[%s6677_s3 + $0x88] sm:$0xff]  }
 0x357   :  { %4979 = vmatprep.subr.bf16.mxu0 %v5800_v45 }
 0x35a   :  { %4980 = vmatpush3.bf16.msra.mxu0 %v5800_v45  ;;  %v6063_v45 = vpop.f32.mrf.mxu0 }
 0x35b   :  { %4981 = vmatprep.subr.bf16.mxu0 %v5806_v51 }
 0x35e   :  { %4982 = vmatpush3.bf16.msra.mxu0 %v5806_v51 }
 0x35f   :  { %4983 = vmatprep.subr.bf16.mxu0 %v5812_v57 }
 0x362   :  { %4984 = vmatpush3.bf16.msra.mxu0 %v5812_v57  ;;  %v5373_v57 = vld [vmem:[%s6678_s4 + $0xe0] sm:$0xff]  }
 0x363   :  { %4985 = vmatprep.subr.bf16.mxu0 %v5816_v0 }
 0x366   :  { %4986 = vmatpush3.bf16.msra.mxu0 %v5816_v0  ;;  %v5376_v0 = vld [vmem:[%s6678_s4 + $0xc8] sm:$0xff]  }
 0x367   :  { %4987 = vmatprep.subr.bf16.mxu0 %v5820_v55 }
 0x36a   :  { %4988 = vmatpush3.bf16.msra.mxu0 %v5820_v55 }
 0x36d   :  { %v4751_v5 = vpop.f32.mrf.mxu0  ;;  %4990 = vmatmul.mubr.bf16.vlgmr.msra.gmra.mxu0 %v5367_v40  ;;  %v5402_v40 = vld [vmem:[%s6678_s4 + $0x1f8] sm:$0xff]  }
 0x36f   :  { %v916_v51 = vpop.f32.mrf.mxu0 }
 0x371   :  { %v4752_v52 = vpop.f32.mrf.mxu0 }
 0x372   :  { %v932_v54 = vpack.c.bf16 %v4752_v52, %v4751_v5 }
 0x373   :  { %v919_v53 = vpop.f32.mrf.mxu0 }
 0x374   :  { %v931_v59 = vpack.c.bf16 %v919_v53, %v916_v51  ;;  %v5403_v53 = vld [vmem:[%s6678_s4 + $0x1f0] sm:$0xff]  }
 0x376   :  { %4769 = vmatprep.mubr.bf16.mxu1 %v931_v59  ;;  %v5404_v59 = vld [vmem:[%s6678_s4 + $0x1e8] sm:$0xff]  }
 0x377   :  { %4770 = vmatmul.mubr.bf16.vlgmr.msra.gmra.mxu1 %v932_v54  ;;  %v5405_v54 = vld [vmem:[%s6678_s4 + $0x1e0] sm:$0xff]  }
 0x378   :  { %4794 = vmatpush3.bf16.msra.mxu1 %v5974_v43  ;;  %v5398_v43 = vld [vmem:[%s6678_s4 + $0x198] sm:$0xff]  }
 0x379   :  { %4795 = vmatprep.subr.bf16.mxu1 %v5371_v56 }
 0x37c   :  { %4796 = vmatpush3.bf16.msra.mxu1 %v5371_v56  ;;  %v5406_v56 = vld [vmem:[%s6678_s4 + $0x1d8] sm:$0xff]  }
 0x37d   :  { %4797 = vmatprep.subr.bf16.mxu1 %v5372_v62 }
 0x380   :  { %4798 = vmatpush3.bf16.msra.mxu1 %v5372_v62  ;;  %v5407_v62 = vld [vmem:[%s6678_s4 + $0x1d0] sm:$0xff]  }
 0x381   :  { %4799 = vmatprep.subr.bf16.mxu1 %v5373_v57 }
 0x384   :  { %4800 = vmatpush3.bf16.msra.mxu1 %v5373_v57  ;;  %v5408_v57 = vld [vmem:[%s6678_s4 + $0x1c8] sm:$0xff]  }
 0x385   :  { %4801 = vmatprep.subr.bf16.mxu1 %v5374_v60 }
 0x388   :  { %4802 = vmatpush3.bf16.msra.mxu1 %v5374_v60 }
 0x389   :  { %4803 = vmatprep.subr.bf16.mxu1 %v5375_v63 }
 0x38c   :  { %4804 = vmatpush3.bf16.msra.mxu1 %v5375_v63  ;;  %v5409_v63 = vld [vmem:[%s6678_s4 + $0x1c0] sm:$0xff]  }
 0x38d   :  { %v4791_v55 = vpop.f32.mrf.mxu0  ;;  %4805 = vmatprep.subr.bf16.mxu1 %v5376_v0 }
 0x38f   :  { %v1102_v1 = vpop.f32.mrf.mxu0 }
 0x390   :  { %4806 = vmatpush3.bf16.msra.mxu1 %v5376_v0 }
 0x391   :  { %v4792_v3 = vpop.f32.mrf.mxu0  ;;  %4807 = vmatprep.subr.bf16.mxu1 %v5377_v58 }
 0x392   :  { %v1118_v9 = vpack.c.bf16 %v4792_v3, %v4791_v55 }
 0x393   :  { %v1105_v6 = vpop.f32.mrf.mxu0 }
 0x394   :  { %v1117_v7 = vpack.c.bf16 %v1105_v6, %v1102_v1  ;;  %4808 = vmatpush3.bf16.msra.mxu1 %v5377_v58  ;;  %v5410_v58 = vld [vmem:[%s6678_s4 + $0x238] sm:$0xff]   ;;  %v5411_v6 = vld [vmem:[%s6678_s4 + $0x230] sm:$0xff]  }
 0x395   :  { %4833 = vmatprep.subr.bf16.mxu1 %v5378_v4 }
 0x396   :  { %4809 = vmatprep.mubr.bf16.mxu1 %v1117_v7  ;;  %v5412_v7 = vld [vmem:[%s6678_s4 + $0x228] sm:$0xff]  }
 0x397   :  { %4810 = vmatmul.mubr.bf16.vlgmr.msra.gmra.mxu1 %v1118_v9  ;;  %v5413_v9 = vld [vmem:[%s6678_s4 + $0x220] sm:$0xff]  }
 0x398   :  { %4834 = vmatpush3.bf16.msra.mxu1 %v5378_v4 }
 0x399   :  { %4835 = vmatprep.subr.bf16.mxu1 %v5379_v10 }
 0x39c   :  { %4836 = vmatpush3.bf16.msra.mxu1 %v5379_v10  ;;  %v5414_v10 = vld [vmem:[%s6678_s4 + $0x218] sm:$0xff]  }
 0x39d   :  { %4837 = vmatprep.subr.bf16.mxu1 %v5380_v12 }
 0x3a0   :  { %4838 = vmatpush3.bf16.msra.mxu1 %v5380_v12  ;;  %v5415_v12 = vld [vmem:[%s6678_s4 + $0x210] sm:$0xff]  }
 0x3a1   :  { %4839 = vmatprep.subr.bf16.mxu1 %v5381_v13 }
 0x3a4   :  { %4840 = vmatpush3.bf16.msra.mxu1 %v5381_v13  ;;  %v5416_v13 = vld [vmem:[%s6678_s4 + $0x208] sm:$0xff]  }
 0x3a5   :  { %4841 = vmatprep.subr.bf16.mxu1 %v5382_v15 }
 0x3a8   :  { %4842 = vmatpush3.bf16.msra.mxu1 %v5382_v15 }
 0x3a9   :  { %4843 = vmatprep.subr.bf16.mxu1 %v5383_v16 }
 0x3ac   :  { %4844 = vmatpush3.bf16.msra.mxu1 %v5383_v16  ;;  %v5417_v16 = vld [vmem:[%s6678_s4 + $0x200] sm:$0xff]  }
 0x3ad   :  { %v4831_v19 = vpop.f32.mrf.mxu0  ;;  %4845 = vmatprep.subr.bf16.mxu1 %v5384_v18 }
 0x3af   :  { %v1288_v21 = vpop.f32.mrf.mxu0 }
 0x3b0   :  { %4846 = vmatpush3.bf16.msra.mxu1 %v5384_v18 }
 0x3b1   :  { %v4832_v22 = vpop.f32.mrf.mxu0  ;;  %4847 = vmatprep.subr.bf16.mxu1 %v5385_v46 }
 0x3b2   :  { %v1304_v28 = vpack.c.bf16 %v4832_v22, %v4831_v19 }
 0x3b3   :  { %v1291_v25 = vpop.f32.mrf.mxu0 }
 0x3b4   :  { %v1303_v27 = vpack.c.bf16 %v1291_v25, %v1288_v21  ;;  %4848 = vmatpush3.bf16.msra.mxu1 %v5385_v46 }
 0x3b5   :  { %4873 = vmatprep.subr.bf16.mxu1 %v5386_v24 }
 0x3b6   :  { %4849 = vmatprep.mubr.bf16.mxu1 %v1303_v27 }
 0x3b7   :  { %4850 = vmatmul.mubr.bf16.vlgmr.msra.gmra.mxu1 %v1304_v28 }
 0x3b8   :  { %4874 = vmatpush3.bf16.msra.mxu1 %v5386_v24  ;;  %v4731_v24 = vpop.f32.mrf.mxu1 }
 0x3b9   :  { %4875 = vmatprep.subr.bf16.mxu1 %v5387_v30 }
 0x3ba   :  { %v850_v25 = vpop.f32.mrf.mxu1 }
 0x3bc   :  { %4876 = vmatpush3.bf16.msra.mxu1 %v5387_v30  ;;  %v4732_v27 = vpop.f32.mrf.mxu1 }
 0x3bd   :  { %4877 = vmatprep.subr.bf16.mxu1 %v5388_v26 }
 0x3be   :  { %v853_v28 = vpop.f32.mrf.mxu1 }
 0x3c0   :  { %4878 = vmatpush3.bf16.msra.mxu1 %v5388_v26 }
 0x3c1   :  { %4879 = vmatprep.subr.bf16.mxu1 %v5389_v29 }
 0x3c4   :  { %4880 = vmatpush3.bf16.msra.mxu1 %v5389_v29 }
 0x3c5   :  { %4881 = vmatprep.subr.bf16.mxu1 %v5390_v32 }
 0x3c8   :  { %4882 = vmatpush3.bf16.msra.mxu1 %v5390_v32 }
 0x3c9   :  { %4883 = vmatprep.subr.bf16.mxu1 %v5391_v37 }
 0x3cc   :  { %4884 = vmatpush3.bf16.msra.mxu1 %v5391_v37 }
 0x3cd   :  { %v4871_v34 = vpop.f32.mrf.mxu0  ;;  %4885 = vmatprep.subr.bf16.mxu1 %v5392_v33 }
 0x3cf   :  { %v1474_v23 = vpop.f32.mrf.mxu0 }
 0x3d0   :  { %4886 = vmatpush3.bf16.msra.mxu1 %v5392_v33 }
 0x3d1   :  { %v4872_v14 = vpop.f32.mrf.mxu0  ;;  %4887 = vmatprep.subr.bf16.mxu1 %v5393_v35 }
 0x3d2   :  { %v1490_v39 = vpack.c.bf16 %v4872_v14, %v4871_v34 }
 0x3d3   :  { %v1477_v36 = vpop.f32.mrf.mxu0 }
 0x3d4   :  { %v1489_v38 = vpack.c.bf16 %v1477_v36, %v1474_v23  ;;  %4888 = vmatpush3.bf16.msra.mxu1 %v5393_v35 }
 0x3d5   :  { %4913 = vmatprep.subr.bf16.mxu1 %v5394_v17 }
 0x3d6   :  { %4889 = vmatprep.mubr.bf16.mxu1 %v1489_v38  ;;  %v5529_v38 = vmov 0.0  }
 0x3d7   :  { %4890 = vmatmul.mubr.bf16.vlgmr.msra.gmra.mxu1 %v1490_v39  ;;  %5013 = vmatprep.subr.bf16.mxu0 %v5529_v38 }
 0x3d8   :  { %4914 = vmatpush3.bf16.msra.mxu1 %v5394_v17  ;;  %5017 = vmatprep.mubr.msk.bf16.mxu0 %vm5530_vm0, %v5529_v38 }
 0x3d9   :  { %4915 = vmatprep.subr.bf16.mxu1 %v5395_v41 }
 0x3dc   :  { %4916 = vmatpush3.bf16.msra.mxu1 %v5395_v41 }
 0x3dd   :  { %4917 = vmatprep.subr.bf16.mxu1 %v5396_v42 }
 0x3e0   :  { %4918 = vmatpush3.bf16.msra.mxu1 %v5396_v42 }
 0x3e1   :  { %4919 = vmatprep.subr.bf16.mxu1 %v5397_v8 }
 0x3e4   :  { %4920 = vmatpush3.bf16.msra.mxu1 %v5397_v8 }
 0x3e5   :  { %4921 = vmatprep.subr.bf16.mxu1 %v5398_v43 }
 0x3e8   :  { %4922 = vmatpush3.bf16.msra.mxu1 %v5398_v43 }
 0x3e9   :  { %4923 = vmatprep.subr.bf16.mxu1 %v5399_v44 }
 0x3ec   :  { %4924 = vmatpush3.bf16.msra.mxu1 %v5399_v44 }
 0x3ed   :  { %v4911_v47 = vpop.f32.mrf.mxu0  ;;  %4925 = vmatprep.subr.bf16.mxu1 %v5400_v11 }
 0x3ef   :  { %v1660_v2 = vpop.f32.mrf.mxu0 }
 0x3f0   :  { %4926 = vmatpush3.bf16.msra.mxu1 %v5400_v11 }
 0x3f1   :  { %v4912_v49 = vpop.f32.mrf.mxu0  ;;  %4927 = vmatprep.subr.bf16.mxu1 %v5401_v48 }
 0x3f2   :  { %v1676_v52 = vpack.c.bf16 %v4912_v49, %v4911_v47  ;;  %v851_v49 = vadd.f32 %v850_v25, %v6052_v31 }
 0x3f3   :  { %v1663_v5 = vpop.f32.mrf.mxu0 }
 0x3f4   :  { %v1675_v51 = vpack.c.bf16 %v1663_v5, %v1660_v2  ;;  %4928 = vmatpush3.bf16.msra.mxu1 %v5401_v48 }
 0x3f5   :  { %4953 = vmatprep.subr.bf16.mxu1 %v5402_v40 }
 0x3f6   :  { %4929 = vmatprep.mubr.bf16.mxu1 %v1675_v51  ;;  %v859_v51 = vadd.f32 %v4731_v24, %v6048_v50 }
 0x3f7   :  { %4930 = vmatmul.mubr.bf16.vlgmr.msra.gmra.mxu1 %v1676_v52 }
 0x3f8   :  { %4954 = vmatpush3.bf16.msra.mxu1 %v5402_v40  ;;  %v854_v40 = vadd.f32 %v853_v28, %v6063_v45 }
 0x3f9   :  { %4955 = vmatprep.subr.bf16.mxu1 %v5403_v53 }
 0x3fc   :  { %4956 = vmatpush3.bf16.msra.mxu1 %v5403_v53 }
 0x3fd   :  { %4957 = vmatprep.subr.bf16.mxu1 %v5404_v59 }
 0x400   :  { %4958 = vmatpush3.bf16.msra.mxu1 %v5404_v59  ;;  %v862_v59 = vadd.f32 %v4732_v27, %v6056_v20 }
 0x401   :  { %4959 = vmatprep.subr.bf16.mxu1 %v5405_v54 }
 0x404   :  { %4960 = vmatpush3.bf16.msra.mxu1 %v5405_v54 }
 0x405   :  { %4961 = vmatprep.subr.bf16.mxu1 %v5406_v56 }
 0x408   :  { %4962 = vmatpush3.bf16.msra.mxu1 %v5406_v56 }
 0x409   :  { %4963 = vmatprep.subr.bf16.mxu1 %v5407_v62 }
 0x40c   :  { %4964 = vmatpush3.bf16.msra.mxu1 %v5407_v62 }
 0x40d   :  { %v4951_v60 = vpop.f32.mrf.mxu0  ;;  %4965 = vmatprep.subr.bf16.mxu1 %v5408_v57 }
 0x40f   :  { %v1846_v0 = vpop.f32.mrf.mxu0 }
 0x410   :  { %4966 = vmatpush3.bf16.msra.mxu1 %v5408_v57 }
 0x411   :  { %v4952_v55 = vpop.f32.mrf.mxu0  ;;  %4967 = vmatprep.subr.bf16.mxu1 %v5409_v63 }
 0x412   :  { %v1862_v4 = vpack.c.bf16 %v4952_v55, %v4951_v60 }
 0x413   :  { %v1849_v1 = vpop.f32.mrf.mxu0 }
 0x414   :  { %v1861_v3 = vpack.c.bf16 %v1849_v1, %v1846_v0  ;;  %4968 = vmatpush3.bf16.msra.mxu1 %v5409_v63 }
 0x415   :  { %4993 = vmatprep.subr.bf16.mxu1 %v5410_v58 }
 0x416   :  { %4969 = vmatprep.mubr.bf16.mxu1 %v1861_v3 }
 0x417   :  { %4970 = vmatmul.mubr.bf16.vlgmr.msra.gmra.mxu1 %v1862_v4 }
 0x418   :  { %4994 = vmatpush3.bf16.msra.mxu1 %v5410_v58 }
 0x419   :  { %4995 = vmatprep.subr.bf16.mxu1 %v5411_v6 }
 0x41c   :  { %4996 = vmatpush3.bf16.msra.mxu1 %v5411_v6 }
 0x41d   :  { %4997 = vmatprep.subr.bf16.mxu1 %v5412_v7 }
 0x420   :  { %4998 = vmatpush3.bf16.msra.mxu1 %v5412_v7 }
 0x421   :  { %4999 = vmatprep.subr.bf16.mxu1 %v5413_v9 }
 0x424   :  { %5000 = vmatpush3.bf16.msra.mxu1 %v5413_v9 }
 0x425   :  { %5001 = vmatprep.subr.bf16.mxu1 %v5414_v10 }
 0x428   :  { %5002 = vmatpush3.bf16.msra.mxu1 %v5414_v10 }
 0x429   :  { %5003 = vmatprep.subr.bf16.mxu1 %v5415_v12 }
 0x42c   :  { %5004 = vmatpush3.bf16.msra.mxu1 %v5415_v12 }
 0x42d   :  { %v4991_v15 = vpop.f32.mrf.mxu0  ;;  %5005 = vmatprep.subr.bf16.mxu1 %v5416_v13 }
 0x42f   :  { %v2032_v18 = vpop.f32.mrf.mxu0 }
 0x430   :  { %5006 = vmatpush3.bf16.msra.mxu1 %v5416_v13 }
 0x431   :  { %v4992_v19 = vpop.f32.mrf.mxu0  ;;  %5007 = vmatprep.subr.bf16.mxu1 %v5417_v16 }
 0x432   :  { %v2048_v22 = vpack.c.bf16 %v4992_v19, %v4991_v15 }
 0x433   :  { %v2035_v46 = vpop.f32.mrf.mxu0 }
 0x434   :  { %v2047_v21 = vpack.c.bf16 %v2035_v46, %v2032_v18  ;;  %5008 = vmatpush3.bf16.msra.mxu1 %v5417_v16 }
 0x435   :  { %5021 = vmatprep.subr.bf16.mxu1 %v5529_v38 }
 0x436   :  { %5009 = vmatprep.mubr.bf16.mxu1 %v2047_v21 }
 0x437   :  { %5010 = vmatmul.mubr.bf16.vlgmr.msra.gmra.mxu1 %v2048_v22  ;;  %v4771_v30 = vpop.f32.mrf.mxu1 }
 0x438   :  { %5025 = vmatprep.mubr.msk.bf16.mxu1 %vm5530_vm0, %v5529_v38  ;;  %v1049_v54 = vadd.f32 %v4771_v30, %v859_v51 }
 0x439   :  { %v1032_v26 = vpop.f32.mrf.mxu1 }
 0x43a   :  { %v1047_v52 = vadd.f32 %v1032_v26, %v851_v49 }
 0x43b   :  { %v4772_v29 = vpop.f32.mrf.mxu1 }
 0x43c   :  { %v1050_v60 = vadd.f32 %v4772_v29, %v862_v59 }
 0x43d   :  { %v1035_v32 = vpop.f32.mrf.mxu1 }
 0x43e   :  { %v1048_v53 = vadd.f32 %v1035_v32, %v854_v40 }
 0x457   :  { %v4811_v37 = vpop.f32.mrf.mxu1 }
 0x458   :  { %v1235_v63 = vadd.f32 %v4811_v37, %v1049_v54  ;;  %v6221_v54 = vld [vmem:[%s6676_s2] sm:$0xff] }
 0x459   :  { %v1218_v33 = vpop.f32.mrf.mxu1 }
 0x45a   :  { %v1233_v56 = vadd.f32 %v1218_v33, %v1047_v52 }
 0x45b   :  { %v4812_v34 = vpop.f32.mrf.mxu1 }
 0x45c   :  { %v1236_v1 = vadd.f32 %v4812_v34, %v1050_v60  ;;  %v2213_v60 = vsub.s32 3, %v5772_v61 }
 0x45d   :  { %v1221_v35 = vpop.f32.mrf.mxu1 }
 0x45e   :  { %v1234_v62 = vadd.f32 %v1221_v35, %v1048_v53  ;;  %v2205_v53 = vsub.s32 2, %v5772_v61 }
 0x477   :  { %v4851_v23 = vpop.f32.mrf.mxu1 }
 0x478   :  { %v1421_v31 = vadd.f32 %v4851_v23, %v1235_v63 }
 0x479   :  { %v1404_v14 = vpop.f32.mrf.mxu1 }
 0x47a   :  { %v1419_v0 = vadd.f32 %v1404_v14, %v1233_v56 }
 0x47b   :  { %v4852_v17 = vpop.f32.mrf.mxu1 }
 0x47c   :  { %v1422_v6 = vadd.f32 %v4852_v17, %v1236_v1 }
 0x47d   :  { %v1407_v36 = vpop.f32.mrf.mxu1 }
 0x47e   :  { %v1420_v55 = vadd.f32 %v1407_v36, %v1234_v62 }
 0x497   :  { %v4891_v39 = vpop.f32.mrf.mxu1 }
 0x498   :  { %v1607_v50 = vadd.f32 %v4891_v39, %v1421_v31 }
 0x499   :  { %v1590_v41 = vpop.f32.mrf.mxu1 }
 0x49a   :  { %v1605_v3 = vadd.f32 %v1590_v41, %v1419_v0 }
 0x49b   :  { %v4892_v42 = vpop.f32.mrf.mxu1 }
 0x49c   :  { %v1608_v20 = vadd.f32 %v4892_v42, %v1422_v6 }
 0x49d   :  { %v1593_v8 = vpop.f32.mrf.mxu1 }
 0x49e   :  { %v1606_v45 = vadd.f32 %v1593_v8, %v1420_v55 }
 0x4b7   :  { %v4931_v43 = vpop.f32.mrf.mxu1 }
 0x4b8   :  { %v1793_v12 = vadd.f32 %v4931_v43, %v1607_v50 }
 0x4b9   :  { %v1776_v44 = vpop.f32.mrf.mxu1 }
 0x4ba   :  { %v1791_v7 = vadd.f32 %v1776_v44, %v1605_v3 }
 0x4bb   :  { %v4932_v11 = vpop.f32.mrf.mxu1 }
 0x4bc   :  { %v1794_v18 = vadd.f32 %v4932_v11, %v1608_v20 }
 0x4bd   :  { %v1779_v47 = vpop.f32.mrf.mxu1 }
 0x4be   :  { %v1792_v9 = vadd.f32 %v1779_v47, %v1606_v45 }
 0x4d7   :  { %v4971_v48 = vpop.f32.mrf.mxu1 }
 0x4d8   :  { %v1979_v19 = vadd.f32 %v4971_v48, %v1793_v12 }
 0x4d9   :  { %v1962_v2 = vpop.f32.mrf.mxu1 }
 0x4da   :  { %v1977_v13 = vadd.f32 %v1962_v2, %v1791_v7 }
 0x4db   :  { %v4972_v5 = vpop.f32.mrf.mxu1 }
 0x4dc   :  { %v1980_v22 = vadd.f32 %v4972_v5, %v1794_v18  ;;  %v5418_v18 = vld [vmem:[%s6680_s6 + $0x78] sm:$0xff]  }
 0x4dd   :  { %v1965_v57 = vpop.f32.mrf.mxu1 }
 0x4de   :  { %v1978_v15 = vadd.f32 %v1965_v57, %v1792_v9 }
 0x4f7   :  { %v5011_v58 = vpop.f32.mrf.mxu1 }
 0x4f8   :  { %v2165_v24 = vadd.f32 %v5011_v58, %v1979_v19  ;;  %v5419_v19 = vld [vmem:[%s6680_s6 + $0x38] sm:$0xff]  }
 0x4f9   :  { %v2148_v4 = vpop.f32.mrf.mxu1 }
 0x4fa   :  { %v2163_v46 = vadd.f32 %v2148_v4, %v1977_v13 }
 0x4fb   :  { %v5012_v10 = vpop.f32.mrf.mxu1 }
 0x4fc   :  { %v2166_v27 = vadd.f32 %v5012_v10, %v1980_v22  ;;  %v5422_v22 = vld [vmem:[%s6680_s6 + $0x68] sm:$0xff]  }
 0x4fd   :  { %v2151_v16 = vpop.f32.mrf.mxu1 }
 0x4fe   :  { %v2164_v21 = vadd.f32 %v2151_v16, %v1978_v15  ;;  %v4068_v15 = vld [vmem:[%s6679_s5 + $0x4] sm:$0xf]  ;;  %v2225_v16 = vld [vmem:[%s6679_s5] sm:$0xf] }
 0x500   :  { %v2167_v25 = vadd.f32 %v2164_v21, %v2163_v46 }
 0x502   :  { %v2168_v28 = vadd.f32 %v2167_v25, %v2165_v24  ;;  %v5424_v25 = vld [vmem:[%s6680_s6 + $0x60] sm:$0xff]  }
 0x504   :  { %v2169_v30 = vadd.f32 %v2168_v28, %v2166_v27  ;;  %v5426_v28 = vld [vmem:[%s6680_s6 + $0x58] sm:$0xff]  }
 0x506   :  { %v2170_v26 = vrot.slane %v2169_v30, 4 }
 0x508   :  { %v2171_v29 = vadd.f32 %v2170_v26, %v2169_v30  ;;  %v5427_v30 = vld [vmem:[%s6680_s6 + $0x18] sm:$0xff]   ;;  %v5428_v26 = vld [vmem:[%s6680_s6 + $0x50] sm:$0xff]  }
 0x50a   :  { %v2172_v32 = vrot.slane %v2171_v29, 2 }
 0x50c   :  { %v2173_v37 = vadd.f32 %v2172_v32, %v2171_v29  ;;  %v5429_v29 = vld [vmem:[%s6680_s6 + $0x10] sm:$0xff]   ;;  %v5430_v32 = vld [vmem:[%s6680_s6 + $0x48] sm:$0xff]  }
 0x50e   :  { %v2174_v33 = vrot.slane %v2173_v37, 1 }
 0x510   :  { %v2175_v34 = vadd.f32 %v2174_v33, %v2173_v37  ;;  %v5431_v37 = vld [vmem:[%s6680_s6 + $0x8] sm:$0xff]   ;;  %v5432_v33 = vld [vmem:[%s6680_s6 + $0x40] sm:$0xff]  }
 0x512   :  { %v2176_v35 = vmul.f32 0.03125, %v2175_v34  ;;  %v5433_v34 = vld [vmem:[%s6680_s6] sm:$0xff]  }
 0x514   :  { %v2177_v23 = vsub.f32 %v2163_v46, %v2176_v35  ;;  %v2178_v14 = vsub.f32 %v2164_v21, %v2176_v35  ;;  %v2179_v17 = vsub.f32 %v2165_v24, %v2176_v35  ;;  %v2180_v36 = vsub.f32 %v2166_v27, %v2176_v35 }
 0x516   :  { %v2181_v39 = vmul.f32 %v2177_v23, %v2177_v23  ;;  %v2182_v41 = vmul.f32 %v2178_v14, %v2178_v14  ;;  %v2183_v42 = vmul.f32 %v2179_v17, %v2179_v17  ;;  %v2184_v43 = vmul.f32 %v2180_v36, %v2180_v36  ;;  %v5434_v36 = vld [vmem:[%s6680_s6 + $0xb8] sm:$0xff]  }
 0x518   :  { %v2185_v8 = vadd.f32 %v2182_v41, %v2181_v39 }
 0x51a   :  { %v2186_v44 = vadd.f32 %v2185_v8, %v2183_v42 }
 0x51c   :  { %v2187_v11 = vadd.f32 %v2186_v44, %v2184_v43  ;;  %v5435_v43 = vld [vmem:[%s6680_s6 + $0xb0] sm:$0xff]  }
 0x51e   :  { %v2188_v47 = vrot.slane %v2187_v11, 4 }
 0x520   :  { %v2189_v48 = vadd.f32 %v2188_v47, %v2187_v11  ;;  %v4102_v47 = vld [vmem:[%s6679_s5 + $0x8] sm:$0xf] }
 0x522   :  { %v2190_v2 = vrot.slane %v2189_v48, 2 }
 0x524   :  { %v2191_v49 = vadd.f32 %v2190_v2, %v2189_v48  ;;  %v5436_v48 = vld [vmem:[%s6680_s6 + $0xa8] sm:$0xff]   ;;  %v5438_v2 = vld [vmem:[%s6680_s6 + $0xa0] sm:$0xff]  }
 0x526   :  { %v2192_v40 = vrot.slane %v2191_v49, 1 }
 0x528   :  { %v2193_v5 = vadd.f32 %v2192_v40, %v2191_v49  ;;  %v4128_v49 = vld [vmem:[%s6679_s5 + $0xc] sm:$0xf]  ;;  %v5437_v40 = vld [vmem:[%s6680_s6 + $0xf8] sm:$0xff]  }
 0x52a   :  { %v2194_v51 = vmul.f32 0.03125, %v2193_v5  ;;  %v5440_v5 = vld [vmem:[%s6680_s6 + $0x98] sm:$0xff]  }
 0x52c   :  { %v2195_v52 = vadd.f32 1e-05, %v2194_v51  ;;  %v5439_v51 = vld [vmem:[%s6680_s6 + $0xf0] sm:$0xff]  }
 0x52e   :  { %5500 = vrsqrt.f32 %v2195_v52  ;;  %v5442_v52 = vld [vmem:[%s6680_s6 + $0x90] sm:$0xff]  }
 0x53b   :  { %v5501_v59 = vpop.eup %5500 }
 0x53c   :  { %v2197_v56 = vmul.f32 %v6221_v54, %v5501_v59  ;;  %v5443_v59 = vld [vmem:[%s6680_s6 + $0xe0] sm:$0xff]  }
 0x53e   :  { %v2198_v62 = vmul.f32 %v2197_v56, %v2176_v35  ;;  %v2206_v57 = vrot.slane %v2197_v56, %v2205_v53  ;;  %v5441_v53 = vld [vmem:[%s6680_s6 + $0xe8] sm:$0xff]  }
 0x53f   :  { %v5444_v56 = vld [vmem:[%s6680_s6 + $0x88] sm:$0xff]  }
 0x540   :  { %v2200_v63 = vrot.slane %v2198_v62, 7  ;;  %v2207_v0 = vmul.f32 %v2206_v57, %v2163_v46  ;;  %v2208_v55 = vmul.f32 %v2206_v57, %v2164_v21  ;;  %v2209_v58 = vmul.f32 %v2206_v57, %v2165_v24  ;;  %v5420_v46 = vld [vmem:[%s6680_s6 + $0x70] sm:$0xff]   ;;  %v5423_v24 = vld [vmem:[%s6680_s6 + $0x28] sm:$0xff]   ;;  %v5445_v62 = vld [vmem:[%s6680_s6 + $0xd8] sm:$0xff]  }
 0x541   :  { %v2210_v1 = vmul.f32 %v2206_v57, %v2166_v27  ;;  %v5421_v21 = vld [vmem:[%s6680_s6 + $0x30] sm:$0xff]   ;;  %v5425_v27 = vld [vmem:[%s6680_s6 + $0x20] sm:$0xff]  }
 0x542   :  { %v2202_v31 = vsub.f32 %v6221_v54, %v2200_v63  ;;  %v5446_v57 = vld [vmem:[%s6680_s6 + $0x80] sm:$0xff]   ;;  %v5448_v63 = vld [vmem:[%s6680_s6 + $0xc8] sm:$0xff]  }
 0x544   :  { %v2214_v3 = vrot.slane %v2202_v31, %v2213_v60  ;;  %v5447_v60 = vld [vmem:[%s6680_s6 + $0xd0] sm:$0xff]  }
 0x546   :  { %v2215_v45 = vadd.f32 %v2214_v3, %v2207_v0  ;;  %v2216_v4 = vadd.f32 %v2214_v3, %v2208_v55  ;;  %v2217_v6 = vadd.f32 %v2214_v3, %v2209_v58  ;;  %v2218_v50 = vadd.f32 %v2214_v3, %v2210_v1  ;;  %v5449_v0 = vld [vmem:[%s6680_s6 + $0xc0] sm:$0xff]  }
 0x548   :  { %v2219_v7 = vmax.f32 %v2215_v45, 0.0  ;;  %v2220_v9 = vmax.f32 %v2216_v4, 0.0  ;;  %v2221_v10 = vmax.f32 %v2217_v6, 0.0  ;;  %v2222_v20 = vmax.f32 %v2218_v50, 0.0 }
 0x54a   :  { %v6226_v12 = vpack.c.bf16 %v2220_v9, %v2219_v7  ;;  %v6228_v13 = vpack.c.bf16 %v2222_v20, %v2221_v10 }
 0x54c   :  { %5014 = vmatpush3.bf16.msra.mxu0 %v6228_v13  ;;  %5022 = vmatpush3.bf16.msra.mxu1 %v6228_v13 }
 0x54d   :  { %5015 = vmatprep.subr.bf16.mxu0 %v5529_v38  ;;  %5023 = vmatprep.subr.bf16.mxu1 %v5529_v38 }
 0x550   :  { %5016 = vmatpush3.bf16.msra.mxu0 %v6226_v12  ;;  %5024 = vmatpush3.bf16.msra.mxu1 %v6226_v12 }
 0x551   :  { %5029 = vmatprep.subr.bf16.mxu0 %v5529_v38  ;;  %5049 = vmatprep.subr.bf16.mxu1 %v5529_v38 }
 0x553   :  { %5026 = vmatmul.mubr.msk.bf16.vlgmr.msra.gmra.mxu1 %vm2226_vm1, %v4068_v15  ;;  %5018 = vmatmul.mubr.msk.bf16.vlgmr.msra.gmra.mxu0 %vm2226_vm1, %v2225_v16 }
 0x554   :  { %5030 = vmatpush3.bf16.msra.mxu0 %v5418_v18  ;;  %5050 = vmatpush3.bf16.msra.mxu1 %v5419_v19  ;;  %v4154_v18 = vld [vmem:[%s6679_s5 + $0x10] sm:$0xf] }
 0x555   :  { %5031 = vmatprep.subr.bf16.mxu0 %v5529_v38  ;;  %5051 = vmatprep.subr.bf16.mxu1 %v5529_v38 }
 0x556   :  { %5045 = vmatprep.mubr.msk.bf16.mxu0 %vm5530_vm0, %v5529_v38  ;;  %5065 = vmatprep.mubr.msk.bf16.mxu1 %vm5530_vm0, %v5529_v38 }
 0x558   :  { %5032 = vmatpush3.bf16.msra.mxu0 %v5420_v46  ;;  %5052 = vmatpush3.bf16.msra.mxu1 %v5421_v21  ;;  %v5450_v46 = vld [vmem:[%s6680_s6 + $0x138] sm:$0xff]  }
 0x559   :  { %5033 = vmatprep.subr.bf16.mxu0 %v5529_v38  ;;  %5053 = vmatprep.subr.bf16.mxu1 %v5529_v38 }
 0x55c   :  { %5034 = vmatpush3.bf16.msra.mxu0 %v5422_v22  ;;  %5054 = vmatpush3.bf16.msra.mxu1 %v5423_v24  ;;  %v5451_v24 = vld [vmem:[%s6680_s6 + $0x130] sm:$0xff]  }
 0x55d   :  { %5035 = vmatprep.subr.bf16.mxu0 %v5529_v38  ;;  %5055 = vmatprep.subr.bf16.mxu1 %v5529_v38 }
 0x560   :  { %5036 = vmatpush3.bf16.msra.mxu0 %v5424_v25  ;;  %5056 = vmatpush3.bf16.msra.mxu1 %v5425_v27  ;;  %v4180_v27 = vld [vmem:[%s6679_s5 + $0x14] sm:$0xf] }
 0x561   :  { %5037 = vmatprep.subr.bf16.mxu0 %v5529_v38  ;;  %5057 = vmatprep.subr.bf16.mxu1 %v5529_v38 }
 0x564   :  { %5038 = vmatpush3.bf16.msra.mxu0 %v5426_v28  ;;  %5058 = vmatpush3.bf16.msra.mxu1 %v5427_v30  ;;  %v5453_v28 = vld [vmem:[%s6680_s6 + $0x178] sm:$0xff]   ;;  %v5452_v30 = vld [vmem:[%s6680_s6 + $0x128] sm:$0xff]  }
 0x565   :  { %5039 = vmatprep.subr.bf16.mxu0 %v5529_v38  ;;  %5059 = vmatprep.subr.bf16.mxu1 %v5529_v38 }
 0x568   :  { %5040 = vmatpush3.bf16.msra.mxu0 %v5428_v26  ;;  %5060 = vmatpush3.bf16.msra.mxu1 %v5429_v29  ;;  %v5455_v26 = vld [vmem:[%s6680_s6 + $0x170] sm:$0xff]   ;;  %v5454_v29 = vld [vmem:[%s6680_s6 + $0x120] sm:$0xff]  }
 0x569   :  { %5041 = vmatprep.subr.bf16.mxu0 %v5529_v38  ;;  %5061 = vmatprep.subr.bf16.mxu1 %v5529_v38 }
 0x56c   :  { %5042 = vmatpush3.bf16.msra.mxu0 %v5430_v32  ;;  %5062 = vmatpush3.bf16.msra.mxu1 %v5431_v37  ;;  %v5457_v32 = vld [vmem:[%s6680_s6 + $0x168] sm:$0xff]   ;;  %v5456_v37 = vld [vmem:[%s6680_s6 + $0x118] sm:$0xff]  }
 0x56d   :  { %5043 = vmatprep.subr.bf16.mxu0 %v5529_v38  ;;  %5063 = vmatprep.subr.bf16.mxu1 %v5529_v38 }
 0x570   :  { %5044 = vmatpush3.bf16.msra.mxu0 %v5432_v33  ;;  %5064 = vmatpush3.bf16.msra.mxu1 %v5433_v34  ;;  %v5459_v33 = vld [vmem:[%s6680_s6 + $0x160] sm:$0xff]   ;;  %v5458_v34 = vld [vmem:[%s6680_s6 + $0x110] sm:$0xff]  }
 0x571   :  { %5069 = vmatprep.subr.bf16.mxu0 %v5529_v38  ;;  %5077 = vmatprep.subr.bf16.mxu1 %v5529_v38 }
 0x613   :  { %v2326_v35 = vpop.f32.mrf.mxu1  ;;  %v2264_v23 = vpop.f32.mrf.mxu0 }
 0x614   :  { %v2332_v14 = vpack.c.bf16 %v2326_v35, %v2326_v35  ;;  %v2270_v17 = vpack.c.bf16 %v2264_v23, %v2264_v23  ;;  %v5460_v35 = vld [vmem:[%s6680_s6 + $0x108] sm:$0xff]   ;;  %v5461_v23 = vld [vmem:[%s6680_s6 + $0x158] sm:$0xff]  }
 0x615   :  { %v5027_v39 = vpop.f32.mrf.mxu1  ;;  %v5019_v41 = vpop.f32.mrf.mxu0 }
 0x616   :  { %5046 = vmatmul.mubr.bf16.vlgmr.msra.gmra.mxu0 %v2332_v14  ;;  %5066 = vmatmul.mubr.bf16.vlgmr.msra.gmra.mxu1 %v2270_v17  ;;  %v5462_v14 = vld [vmem:[%s6680_s6 + $0x100] sm:$0xff]   ;;  %v5463_v17 = vld [vmem:[%s6680_s6 + $0x150] sm:$0xff]  }
 0x617   :  { %5070 = vmatpush3.bf16.msra.mxu0 %v6228_v13  ;;  %v2329_v42 = vpop.f32.mrf.mxu1  ;;  %5073 = vmatprep.mubr.msk.bf16.mxu0 %vm5530_vm0, %v5529_v38  ;;  %v2267_v8 = vpop.f32.mrf.mxu0  ;;  %v5465_v39 = vld [vmem:[%s6680_s6 + $0x140] sm:$0xff]  }
 0x618   :  { %5071 = vmatprep.subr.bf16.mxu0 %v5529_v38  ;;  %5078 = vmatpush3.bf16.msra.mxu1 %v5434_v36  ;;  %v5464_v36 = vld [vmem:[%s6680_s6 + $0x148] sm:$0xff]  }
 0x619   :  { %v5028_v44 = vpop.f32.mrf.mxu1  ;;  %v5020_v11 = vpop.f32.mrf.mxu0  ;;  %5079 = vmatprep.subr.bf16.mxu1 %v5529_v38  ;;  %5093 = vmatprep.mubr.msk.bf16.mxu1 %vm5530_vm0, %v5529_v38 }
 0x61b   :  { %5072 = vmatpush3.bf16.msra.mxu0 %v6226_v12 }
 0x61c   :  { %5097 = vmatprep.subr.bf16.mxu0 %v5529_v38  ;;  %5080 = vmatpush3.bf16.msra.mxu1 %v5435_v43 }
 0x61d   :  { %5081 = vmatprep.subr.bf16.mxu1 %v5529_v38 }
 0x61e   :  { %5074 = vmatmul.mubr.msk.bf16.vlgmr.msra.gmra.mxu0 %vm2226_vm1, %v4102_v47 }
 0x61f   :  { %5098 = vmatpush3.bf16.msra.mxu0 %v6228_v13  ;;  %5101 = vmatprep.mubr.msk.bf16.mxu0 %vm5530_vm0, %v5529_v38 }
 0x620   :  { %5099 = vmatprep.subr.bf16.mxu0 %v5529_v38  ;;  %5082 = vmatpush3.bf16.msra.mxu1 %v5436_v48 }
 0x621   :  { %5083 = vmatprep.subr.bf16.mxu1 %v5529_v38 }
 0x623   :  { %5100 = vmatpush3.bf16.msra.mxu0 %v6226_v12 }
 0x624   :  { %5105 = vmatprep.subr.bf16.mxu0 %v5529_v38  ;;  %5084 = vmatpush3.bf16.msra.mxu1 %v5438_v2 }
 0x625   :  { %5085 = vmatprep.subr.bf16.mxu1 %v5529_v38 }
 0x626   :  { %5102 = vmatmul.mubr.msk.bf16.vlgmr.msra.gmra.mxu0 %vm2226_vm1, %v4128_v49 }
 0x627   :  { %5106 = vmatpush3.bf16.msra.mxu0 %v5437_v40  ;;  %5121 = vmatprep.mubr.msk.bf16.mxu0 %vm5530_vm0, %v5529_v38 }
 0x628   :  { %5107 = vmatprep.subr.bf16.mxu0 %v5529_v38  ;;  %5086 = vmatpush3.bf16.msra.mxu1 %v5440_v5 }
 0x629   :  { %5087 = vmatprep.subr.bf16.mxu1 %v5529_v38 }
 0x62b   :  { %5108 = vmatpush3.bf16.msra.mxu0 %v5439_v51 }
 0x62c   :  { %5109 = vmatprep.subr.bf16.mxu0 %v5529_v38  ;;  %5088 = vmatpush3.bf16.msra.mxu1 %v5442_v52 }
 0x62d   :  { %5089 = vmatprep.subr.bf16.mxu1 %v5529_v38 }
 0x62f   :  { %5110 = vmatpush3.bf16.msra.mxu0 %v5441_v53 }
 0x630   :  { %5111 = vmatprep.subr.bf16.mxu0 %v5529_v38  ;;  %5090 = vmatpush3.bf16.msra.mxu1 %v5444_v56  ;;  %v4206_v56 = vld [vmem:[%s6679_s5 + $0x18] sm:$0xf] }
 0x631   :  { %5091 = vmatprep.subr.bf16.mxu1 %v5529_v38 }
 0x633   :  { %5112 = vmatpush3.bf16.msra.mxu0 %v5443_v59 }
 0x634   :  { %5113 = vmatprep.subr.bf16.mxu0 %v5529_v38  ;;  %5092 = vmatpush3.bf16.msra.mxu1 %v5446_v57  ;;  %v5466_v57 = vld [vmem:[%s6680_s6 + $0x1b8] sm:$0xff]  }
 0x635   :  { %5125 = vmatprep.subr.bf16.mxu1 %v5529_v38 }
 0x637   :  { %5114 = vmatpush3.bf16.msra.mxu0 %v5445_v62 }
 0x638   :  { %5115 = vmatprep.subr.bf16.mxu0 %v5529_v38 }
 0x63b   :  { %5116 = vmatpush3.bf16.msra.mxu0 %v5447_v60 }
 0x63c   :  { %5117 = vmatprep.subr.bf16.mxu0 %v5529_v38 }
 0x63f   :  { %5118 = vmatpush3.bf16.msra.mxu0 %v5448_v63 }
 0x640   :  { %5119 = vmatprep.subr.bf16.mxu0 %v5529_v38 }
 0x643   :  { %5120 = vmatpush3.bf16.msra.mxu0 %v5449_v0  ;;  %v5467_v0 = vld [vmem:[%s6680_s6 + $0x1b0] sm:$0xff]  }
 0x644   :  { %5153 = vmatprep.subr.bf16.mxu0 %v5529_v38 }
 0x6d6   :  { %v2432_v55 = vpop.f32.mrf.mxu0  ;;  %v2520_v58 = vpop.f32.mrf.mxu1 }
 0x6d7   :  { %v6402_v1 = vadd.f32 %v2520_v58, %v2432_v55  ;;  %v4232_v58 = vld [vmem:[%s6679_s5 + $0x1c] sm:$0xf] }
 0x6d8   :  { %v5047_v31 = vpop.f32.mrf.mxu0  ;;  %v5067_v3 = vpop.f32.mrf.mxu1 }
 0x6d9   :  { %v5468_v31 = vld [vmem:[%s6680_s6 + $0x1a8] sm:$0xff]   ;;  %v5471_v3 = vld [vmem:[%s6680_s6 + $0x1f0] sm:$0xff]  }
 0x6da   :  { %v2435_v45 = vpop.f32.mrf.mxu0  ;;  %v2523_v4 = vpop.f32.mrf.mxu1 }
 0x6db   :  { %v5470_v45 = vld [vmem:[%s6680_s6 + $0x1a0] sm:$0xff]   ;;  %v5473_v4 = vld [vmem:[%s6680_s6 + $0x1e8] sm:$0xff]  }
 0x6dc   :  { %v5048_v6 = vpop.f32.mrf.mxu0  ;;  %v5068_v50 = vpop.f32.mrf.mxu1 }
 0x6dd   :  { %v5472_v6 = vld [vmem:[%s6680_s6 + $0x198] sm:$0xff]   ;;  %v5474_v50 = vld [vmem:[%s6680_s6 + $0x190] sm:$0xff]  }
 0x6de   :  { %v2565_v7 = vpop.f32.mrf.mxu0 }
 0x6df   :  { %v2571_v9 = vpack.c.bf16 %v2565_v7, %v2565_v7  ;;  %v5475_v7 = vld [vmem:[%s6680_s6 + $0x1e0] sm:$0xff]  }
 0x6e0   :  { %v5075_v10 = vpop.f32.mrf.mxu0 }
 0x6e1   :  { %5094 = vmatmul.mubr.bf16.vlgmr.msra.gmra.mxu1 %v2571_v9  ;;  %v5476_v9 = vld [vmem:[%s6680_s6 + $0x188] sm:$0xff]   ;;  %v5477_v10 = vld [vmem:[%s6680_s6 + $0x1d8] sm:$0xff]  }
 0x6e2   :  { %5126 = vmatpush3.bf16.msra.mxu1 %v6228_v13  ;;  %v2568_v20 = vpop.f32.mrf.mxu0  ;;  %5129 = vmatprep.mubr.msk.bf16.mxu1 %vm5530_vm0, %v5529_v38 }
 0x6e3   :  { %5127 = vmatprep.subr.bf16.mxu1 %v5529_v38  ;;  %v5478_v20 = vld [vmem:[%s6680_s6 + $0x180] sm:$0xff]  }
 0x6e4   :  { %v5076_v15 = vpop.f32.mrf.mxu0 }
 0x6e5   :  { %v5479_v15 = vld [vmem:[%s6680_s6 + $0x1d0] sm:$0xff]  }
 0x6e6   :  { %5128 = vmatpush3.bf16.msra.mxu1 %v6226_v12  ;;  %v2717_v16 = vpop.f32.mrf.mxu0 }
 0x6e7   :  { %v2723_v19 = vpack.c.bf16 %v2717_v16, %v2717_v16  ;;  %5133 = vmatprep.subr.bf16.mxu1 %v5529_v38  ;;  %v5480_v16 = vld [vmem:[%s6680_s6 + $0x1c8] sm:$0xff]  }
 0x6e8   :  { %v5103_v21 = vpop.f32.mrf.mxu0 }
 0x6e9   :  { %5122 = vmatmul.mubr.bf16.vlgmr.msra.gmra.mxu0 %v2723_v19  ;;  %5130 = vmatmul.mubr.msk.bf16.vlgmr.msra.gmra.mxu1 %vm2226_vm1, %v4154_v18  ;;  %v5481_v18 = vld [vmem:[%s6680_s6 + $0x1c0] sm:$0xff]  }
 0x6ea   :  { %5154 = vmatpush3.bf16.msra.mxu0 %v6228_v13  ;;  %5157 = vmatprep.mubr.msk.bf16.mxu0 %vm5530_vm0, %v5529_v38  ;;  %v2720_v22 = vpop.f32.mrf.mxu0 }
 0x6eb   :  { %5155 = vmatprep.subr.bf16.mxu0 %v5529_v38  ;;  %5134 = vmatpush3.bf16.msra.mxu1 %v5450_v46 }
 0x6ec   :  { %5135 = vmatprep.subr.bf16.mxu1 %v5529_v38  ;;  %v5104_v25 = vpop.f32.mrf.mxu0  ;;  %5149 = vmatprep.mubr.msk.bf16.mxu1 %vm5530_vm0, %v5529_v38 }
 0x6ee   :  { %5156 = vmatpush3.bf16.msra.mxu0 %v6226_v12 }
 0x6ef   :  { %5136 = vmatpush3.bf16.msra.mxu1 %v5451_v24  ;;  %5161 = vmatprep.subr.bf16.mxu0 %v5529_v38 }
 0x6f0   :  { %5137 = vmatprep.subr.bf16.mxu1 %v5529_v38 }
 0x6f1   :  { %5158 = vmatmul.mubr.msk.bf16.vlgmr.msra.gmra.mxu0 %vm2226_vm1, %v4180_v27 }
 0x6f2   :  { %5162 = vmatpush3.bf16.msra.mxu0 %v5453_v28  ;;  %5177 = vmatprep.mubr.msk.bf16.mxu0 %vm5530_vm0, %v5529_v38 }
 0x6f3   :  { %5138 = vmatpush3.bf16.msra.mxu1 %v5452_v30  ;;  %5163 = vmatprep.subr.bf16.mxu0 %v5529_v38 }
 0x6f4   :  { %5139 = vmatprep.subr.bf16.mxu1 %v5529_v38 }
 0x6f6   :  { %5164 = vmatpush3.bf16.msra.mxu0 %v5455_v26 }
 0x6f7   :  { %5140 = vmatpush3.bf16.msra.mxu1 %v5454_v29  ;;  %5165 = vmatprep.subr.bf16.mxu0 %v5529_v38 }
 0x6f8   :  { %5141 = vmatprep.subr.bf16.mxu1 %v5529_v38 }
 0x6fa   :  { %5166 = vmatpush3.bf16.msra.mxu0 %v5457_v32 }
 0x6fb   :  { %5142 = vmatpush3.bf16.msra.mxu1 %v5456_v37  ;;  %5167 = vmatprep.subr.bf16.mxu0 %v5529_v38 }
 0x6fc   :  { %5143 = vmatprep.subr.bf16.mxu1 %v5529_v38 }
 0x6fe   :  { %5168 = vmatpush3.bf16.msra.mxu0 %v5459_v33 }
 0x6ff   :  { %5144 = vmatpush3.bf16.msra.mxu1 %v5458_v34  ;;  %5169 = vmatprep.subr.bf16.mxu0 %v5529_v38 }
 0x700   :  { %5145 = vmatprep.subr.bf16.mxu1 %v5529_v38 }
 0x702   :  { %5170 = vmatpush3.bf16.msra.mxu0 %v5461_v23  ;;  %v4258_v23 = vld [vmem:[%s6679_s5 + $0x20] sm:$0xf] }
 0x703   :  { %5146 = vmatpush3.bf16.msra.mxu1 %v5460_v35  ;;  %5171 = vmatprep.subr.bf16.mxu0 %v5529_v38 }
 0x704   :  { %5147 = vmatprep.subr.bf16.mxu1 %v5529_v38 }
 0x706   :  { %5172 = vmatpush3.bf16.msra.mxu0 %v5463_v17 }
 0x707   :  { %5148 = vmatpush3.bf16.msra.mxu1 %v5462_v14  ;;  %5173 = vmatprep.subr.bf16.mxu0 %v5529_v38 }
 0x708   :  { %5181 = vmatprep.subr.bf16.mxu1 %v5529_v38 }
 0x70a   :  { %5174 = vmatpush3.bf16.msra.mxu0 %v5464_v36 }
 0x70b   :  { %5175 = vmatprep.subr.bf16.mxu0 %v5529_v38 }
 0x70e   :  { %5176 = vmatpush3.bf16.msra.mxu0 %v5465_v39 }
 0x70f   :  { %5209 = vmatprep.subr.bf16.mxu0 %v5529_v38 }
 0x7a1   :  { %v2671_v41 = vpop.f32.mrf.mxu1 }
 0x7a2   :  { %v2677_v42 = vadd.f32 %v2671_v41, %v6402_v1  ;;  %v5469_v1 = vld [vmem:[%s6680_s6 + $0x1f8] sm:$0xff]   ;;  %v5484_v41 = vld [vmem:[%s6680_s6 + $0x228] sm:$0xff]  }
 0x7a3   :  { %v5095_v8 = vpop.f32.mrf.mxu1 }
 0x7a4   :  { %v5486_v8 = vld [vmem:[%s6680_s6 + $0x218] sm:$0xff]  }
 0x7a5   :  { %v2674_v43 = vpop.f32.mrf.mxu1 }
 0x7a6   :  { %v5487_v43 = vld [vmem:[%s6680_s6 + $0x210] sm:$0xff]  }
 0x7a7   :  { %v5096_v44 = vpop.f32.mrf.mxu1 }
 0x7a8   :  { %v5488_v44 = vld [vmem:[%s6680_s6 + $0x208] sm:$0xff]  }
 0x7a9   :  { %v2823_v11 = vpop.f32.mrf.mxu0  ;;  %v2869_v47 = vpop.f32.mrf.mxu1 }
 0x7aa   :  { %v6493_v48 = vadd.f32 %v2823_v11, %v2677_v42  ;;  %v2875_v2 = vpack.c.bf16 %v2869_v47, %v2869_v47  ;;  %v5485_v42 = vld [vmem:[%s6680_s6 + $0x220] sm:$0xff]  }
 0x7ab   :  { %v5123_v49 = vpop.f32.mrf.mxu0  ;;  %v5131_v40 = vpop.f32.mrf.mxu1  ;;  %v5489_v11 = vld [vmem:[%s6680_s6 + $0x200] sm:$0xff]  }
 0x7ac   :  { %5150 = vmatmul.mubr.bf16.vlgmr.msra.gmra.mxu1 %v2875_v2 }
 0x7ad   :  { %5182 = vmatpush3.bf16.msra.mxu1 %v6228_v13  ;;  %v2826_v5 = vpop.f32.mrf.mxu0  ;;  %v2872_v51 = vpop.f32.mrf.mxu1  ;;  %5185 = vmatprep.mubr.msk.bf16.mxu1 %vm5530_vm0, %v5529_v38 }
 0x7ae   :  { %5183 = vmatprep.subr.bf16.mxu1 %v5529_v38 }
 0x7af   :  { %v5124_v52 = vpop.f32.mrf.mxu0  ;;  %v5132_v53 = vpop.f32.mrf.mxu1 }
 0x7b1   :  { %5184 = vmatpush3.bf16.msra.mxu1 %v6226_v12  ;;  %v3021_v59 = vpop.f32.mrf.mxu0 }
 0x7b2   :  { %v3027_v62 = vpack.c.bf16 %v3021_v59, %v3021_v59  ;;  %5189 = vmatprep.subr.bf16.mxu1 %v5529_v38 }
 0x7b3   :  { %v5159_v60 = vpop.f32.mrf.mxu0 }
 0x7b4   :  { %5178 = vmatmul.mubr.bf16.vlgmr.msra.gmra.mxu0 %v3027_v62  ;;  %5186 = vmatmul.mubr.msk.bf16.vlgmr.msra.gmra.mxu1 %vm2226_vm1, %v4206_v56 }
 0x7b5   :  { %5210 = vmatpush3.bf16.msra.mxu0 %v6228_v13  ;;  %5213 = vmatprep.mubr.msk.bf16.mxu0 %vm5530_vm0, %v5529_v38  ;;  %v3024_v63 = vpop.f32.mrf.mxu0 }
 0x7b6   :  { %5211 = vmatprep.subr.bf16.mxu0 %v5529_v38  ;;  %5190 = vmatpush3.bf16.msra.mxu1 %v5466_v57 }
 0x7b7   :  { %5191 = vmatprep.subr.bf16.mxu1 %v5529_v38  ;;  %v5160_v55 = vpop.f32.mrf.mxu0  ;;  %5205 = vmatprep.mubr.msk.bf16.mxu1 %vm5530_vm0, %v5529_v38 }
 0x7b8   :  { %v5491_v55 = vld [vmem:[%s6681_s7 + $0x30] sm:$0xff]  }
 0x7b9   :  { %5212 = vmatpush3.bf16.msra.mxu0 %v6226_v12 }
 0x7ba   :  { %5192 = vmatpush3.bf16.msra.mxu1 %v5467_v0  ;;  %5217 = vmatprep.subr.bf16.mxu0 %v5529_v38  ;;  %v5490_v0 = vld [vmem:[%s6681_s7 + $0x38] sm:$0xff]  }
 0x7bb   :  { %5193 = vmatprep.subr.bf16.mxu1 %v5529_v38 }
 0x7bc   :  { %5214 = vmatmul.mubr.msk.bf16.vlgmr.msra.gmra.mxu0 %vm2226_vm1, %v4232_v58  ;;  %v5492_v58 = vld [vmem:[%s6681_s7 + $0x28] sm:$0xff]  }
 0x7bd   :  { %5218 = vmatpush3.bf16.msra.mxu0 %v5469_v1  ;;  %5233 = vmatprep.mubr.msk.bf16.mxu0 %vm5530_vm0, %v5529_v38  ;;  %v5493_v1 = vld [vmem:[%s6681_s7 + $0x20] sm:$0xff]  }
 0x7be   :  { %5194 = vmatpush3.bf16.msra.mxu1 %v5468_v31  ;;  %5219 = vmatprep.subr.bf16.mxu0 %v5529_v38  ;;  %v5494_v31 = vld [vmem:[%s6681_s7 + $0x18] sm:$0xff]  }
 0x7bf   :  { %5195 = vmatprep.subr.bf16.mxu1 %v5529_v38 }
 0x7c1   :  { %5220 = vmatpush3.bf16.msra.mxu0 %v5471_v3  ;;  %v5495_v3 = vld [vmem:[%s6681_s7 + $0x10] sm:$0xff]  }
 0x7c2   :  { %5196 = vmatpush3.bf16.msra.mxu1 %v5470_v45  ;;  %5221 = vmatprep.subr.bf16.mxu0 %v5529_v38  ;;  %v5496_v45 = vld [vmem:[%s6681_s7 + $0x8] sm:$0xff]  }
 0x7c3   :  { %5197 = vmatprep.subr.bf16.mxu1 %v5529_v38 }
 0x7c5   :  { %5222 = vmatpush3.bf16.msra.mxu0 %v5473_v4  ;;  %v5497_v4 = vld [vmem:[%s6681_s7] sm:$0xff]   ;;  %s5531_s7 = smov [#allocation2]  }
 0x7c6   :  { %5198 = vmatpush3.bf16.msra.mxu1 %v5472_v6  ;;  %5223 = vmatprep.subr.bf16.mxu0 %v5529_v38  ;;  %s3773_s5 = sshll.u32 %s5531_s7, 4  ;;  %s3774_s5 = int_to_ptr.vmem [resolvable:$true] %s3773_s5 }
 0x7c7   :  { %5199 = vmatprep.subr.bf16.mxu1 %v5529_v38  ;;  %s5507_s20 = scalar_lea.vmem %s3774_s5, 128  ;;  %p5512_p1 = scmp.lt.s32.totalorder %s3774_s5, %s3774_s5 }
 0x7c8   :  { %p5508_p0 = scmp.ne.s32.totalorder %s3774_s5, %s5507_s20  ;;  %p5513_p2 = scmp.lt.s32.totalorder %s5507_s20, %s5507_s20 }
 0x7c9   :  { %5224 = vmatpush3.bf16.msra.mxu0 %v5475_v7 }
 0x7ca   :  { %5200 = vmatpush3.bf16.msra.mxu1 %v5474_v50  ;;  %5225 = vmatprep.subr.bf16.mxu0 %v5529_v38  ;;  %p5514_p3 = por %p5513_p2, %p5512_p1 }
 0x7cb   :  { %5201 = vmatprep.subr.bf16.mxu1 %v5529_v38 }
 0x7cc   :  { %p5515_p4 = pnand %p5514_p3, %p5508_p0 }
 0x7cd   :  { %5226 = vmatpush3.bf16.msra.mxu0 %v5477_v10 }
 0x7ce   :  { %5202 = vmatpush3.bf16.msra.mxu1 %v5476_v9  ;;  %5227 = vmatprep.subr.bf16.mxu0 %v5529_v38 }
 0x7cf   :  { %5203 = vmatprep.subr.bf16.mxu1 %v5529_v38 }
 0x7d1   :  { %5228 = vmatpush3.bf16.msra.mxu0 %v5479_v15 }
 0x7d2   :  { %5204 = vmatpush3.bf16.msra.mxu1 %v5478_v20  ;;  %5229 = vmatprep.subr.bf16.mxu0 %v5529_v38 }
 0x7d3   :  { %5237 = vmatprep.subr.bf16.mxu1 %v5529_v38 }
 0x7d5   :  { %5230 = vmatpush3.bf16.msra.mxu0 %v5480_v16 }
 0x7d6   :  { %5231 = vmatprep.subr.bf16.mxu0 %v5529_v38 }
 0x7d9   :  { %5232 = vmatpush3.bf16.msra.mxu0 %v5481_v18 }
 0x7da   :  { %5265 = vmatprep.subr.bf16.mxu0 %v5529_v38 }
 0x86c   :  { %v2975_v19 = vpop.f32.mrf.mxu1 }
 0x86d   :  { %v2981_v46 = vadd.f32 %v2975_v19, %v6493_v48 }
 0x86e   :  { %v5151_v21 = vpop.f32.mrf.mxu1 }
 0x870   :  { %v2978_v22 = vpop.f32.mrf.mxu1 }
 0x872   :  { %v5152_v24 = vpop.f32.mrf.mxu1 }
 0x874   :  { %v3127_v25 = vpop.f32.mrf.mxu0  ;;  %v3173_v27 = vpop.f32.mrf.mxu1 }
 0x875   :  { %v3133_v28 = vadd.f32 %v3127_v25, %v2981_v46  ;;  %v3179_v30 = vpack.c.bf16 %v3173_v27, %v3173_v27 }
 0x876   :  { %v5179_v26 = vpop.f32.mrf.mxu0  ;;  %v5187_v29 = vpop.f32.mrf.mxu1 }
 0x877   :  { %5206 = vmatmul.mubr.bf16.vlgmr.msra.gmra.mxu1 %v3179_v30 }
 0x878   :  { %5238 = vmatpush3.bf16.msra.mxu1 %v6228_v13  ;;  %v3130_v32 = vpop.f32.mrf.mxu0  ;;  %v3176_v37 = vpop.f32.mrf.mxu1  ;;  %5241 = vmatprep.mubr.msk.bf16.mxu1 %vm5530_vm0, %v5529_v38  ;;  %v5482_v13 = vld [vmem:[%s6680_s6 + $0x238] sm:$0xff]  }
 0x879   :  { %5239 = vmatprep.subr.bf16.mxu1 %v5529_v38 }
 0x87a   :  { %v5180_v33 = vpop.f32.mrf.mxu0  ;;  %v5188_v34 = vpop.f32.mrf.mxu1 }
 0x87b   :  { %v3616_v34 = vsub.s32 4, %v5772_v61 }
 0x87c   :  { %5240 = vmatpush3.bf16.msra.mxu1 %v6226_v12  ;;  %v3325_v35 = vpop.f32.mrf.mxu0  ;;  %v5483_v12 = vld [vmem:[%s6680_s6 + $0x230] sm:$0xff]  }
 0x87d   :  { %v3331_v14 = vpack.c.bf16 %v3325_v35, %v3325_v35  ;;  %5245 = vmatprep.subr.bf16.mxu1 %v5529_v38 }
 0x87e   :  { %v5215_v17 = vpop.f32.mrf.mxu0 }
 0x87f   :  { %5234 = vmatmul.mubr.bf16.vlgmr.msra.gmra.mxu0 %v3331_v14  ;;  %5242 = vmatmul.mubr.msk.bf16.vlgmr.msra.gmra.mxu1 %vm2226_vm1, %v4258_v23  ;;  %v3621_v14 = vsub.s32 5, %v5772_v61 }
 0x880   :  { %5246 = vmatpush3.bf16.msra.mxu1 %v5482_v13  ;;  %v3328_v36 = vpop.f32.mrf.mxu0  ;;  %5261 = vmatprep.mubr.msk.bf16.mxu1 %vm5530_vm0, %v5529_v38 }
 0x881   :  { %5247 = vmatprep.subr.bf16.mxu1 %v5529_v38  ;;  %5281 = vmatprep.mubr.msk.bf16.mxu0 %vm5530_vm0, %v5529_v38 }
 0x882   :  { %v5216_v39 = vpop.f32.mrf.mxu0  ;;  %5266 = vmatpush3.bf16.msra.mxu0 %v5490_v0 }
 0x883   :  { %5267 = vmatprep.subr.bf16.mxu0 %v5529_v38 }
 0x884   :  { %5248 = vmatpush3.bf16.msra.mxu1 %v5483_v12 }
 0x885   :  { %5249 = vmatprep.subr.bf16.mxu1 %v5529_v38 }
 0x886   :  { %5268 = vmatpush3.bf16.msra.mxu0 %v5491_v55 }
 0x887   :  { %5269 = vmatprep.subr.bf16.mxu0 %v5529_v38 }
 0x888   :  { %5250 = vmatpush3.bf16.msra.mxu1 %v5484_v41 }
 0x889   :  { %5251 = vmatprep.subr.bf16.mxu1 %v5529_v38 }
 0x88a   :  { %5270 = vmatpush3.bf16.msra.mxu0 %v5492_v58 }
 0x88b   :  { %5271 = vmatprep.subr.bf16.mxu0 %v5529_v38 }
 0x88c   :  { %5252 = vmatpush3.bf16.msra.mxu1 %v5485_v42 }
 0x88d   :  { %5253 = vmatprep.subr.bf16.mxu1 %v5529_v38 }
 0x88e   :  { %5272 = vmatpush3.bf16.msra.mxu0 %v5493_v1 }
 0x88f   :  { %5273 = vmatprep.subr.bf16.mxu0 %v5529_v38 }
 0x890   :  { %5254 = vmatpush3.bf16.msra.mxu1 %v5486_v8 }
 0x891   :  { %5255 = vmatprep.subr.bf16.mxu1 %v5529_v38 }
 0x892   :  { %5274 = vmatpush3.bf16.msra.mxu0 %v5494_v31 }
 0x893   :  { %5275 = vmatprep.subr.bf16.mxu0 %v5529_v38 }
 0x894   :  { %5256 = vmatpush3.bf16.msra.mxu1 %v5487_v43 }
 0x895   :  { %5257 = vmatprep.subr.bf16.mxu1 %v5529_v38 }
 0x896   :  { %5276 = vmatpush3.bf16.msra.mxu0 %v5495_v3 }
 0x897   :  { %5277 = vmatprep.subr.bf16.mxu0 %v5529_v38 }
 0x898   :  { %5258 = vmatpush3.bf16.msra.mxu1 %v5488_v44 }
 0x899   :  { %5259 = vmatprep.subr.bf16.mxu1 %v5529_v38 }
 0x89a   :  { %5278 = vmatpush3.bf16.msra.mxu0 %v5496_v45 }
 0x89b   :  { %5279 = vmatprep.subr.bf16.mxu0 %v5529_v38 }
 0x89c   :  { %5260 = vmatpush3.bf16.msra.mxu1 %v5489_v11 }
 0x89e   :  { %5280 = vmatpush3.bf16.msra.mxu0 %v5497_v4 }
 0x937   :  { %v3279_v47 = vpop.f32.mrf.mxu1 }
 0x938   :  { %v3285_v48 = vadd.f32 %v3279_v47, %v3133_v28 }
 0x939   :  { %v5207_v2 = vpop.f32.mrf.mxu1 }
 0x93b   :  { %v3282_v49 = vpop.f32.mrf.mxu1 }
 0x93d   :  { %v5208_v40 = vpop.f32.mrf.mxu1 }
 0x93f   :  { %v3431_v5 = vpop.f32.mrf.mxu0  ;;  %v3477_v51 = vpop.f32.mrf.mxu1 }
 0x940   :  { %v3437_v52 = vadd.f32 %v3431_v5, %v3285_v48  ;;  %v3483_v53 = vpack.c.bf16 %v3477_v51, %v3477_v51 }
 0x941   :  { %v5243_v59 = vpop.f32.mrf.mxu1  ;;  %v5235_v56 = vpop.f32.mrf.mxu0 }
 0x942   :  { %5262 = vmatmul.mubr.bf16.vlgmr.msra.gmra.mxu1 %v3483_v53 }
 0x943   :  { %v3480_v62 = vpop.f32.mrf.mxu1  ;;  %v3434_v57 = vpop.f32.mrf.mxu0 }
 0x945   :  { %v5244_v60 = vpop.f32.mrf.mxu1  ;;  %v5236_v63 = vpop.f32.mrf.mxu0 }
 0xa02   :  { %v3583_v6 = vpop.f32.mrf.mxu1 }
 0xa03   :  { %v3589_v50 = vadd.f32 %v3583_v6, %v3437_v52 }
 0xa04   :  { %v5263_v7 = vpop.f32.mrf.mxu1 }
 0xa05   :  { %v3590_v9 = vrot.slane %v3589_v50, 4 }
 0xa06   :  { %v3586_v10 = vpop.f32.mrf.mxu1 }
 0xa07   :  { %v3591_v20 = vadd.f32 %v3590_v9, %v3589_v50 }
 0xa08   :  { %v5264_v15 = vpop.f32.mrf.mxu1 }
 0xa09   :  { %v3592_v16 = vrot.slane %v3591_v20, 2 }
 0xa0b   :  { %v3593_v18 = vadd.f32 %v3592_v16, %v3591_v20 }
 0xa0d   :  { %v3594_v19 = vrot.slane %v3593_v18, 1 }
 0xa0f   :  { %v3595_v46 = vadd.f32 %v3594_v19, %v3593_v18 }
 0xa11   :  { %v3596_v21 = vmul.f32 0.125, %v3595_v46 }
 0xa13   :  { %v3597_v22 = vsub.f32 %v3589_v50, %v3596_v21 }
 0xa15   :  { %v3598_v24 = vmul.f32 %v3597_v22, %v3597_v22 }
 0xa17   :  { %v3599_v25 = vrot.slane %v3598_v24, 4 }
 0xa19   :  { %v3600_v27 = vadd.f32 %v3599_v25, %v3598_v24 }
 0xa1b   :  { %v3601_v28 = vrot.slane %v3600_v27, 2 }
 0xa1d   :  { %v3602_v30 = vadd.f32 %v3601_v28, %v3600_v27 }
 0xa1f   :  { %v3603_v38 = vrot.slane %v3602_v30, 1 }
 0xa21   :  { %v3604_v26 = vadd.f32 %v3603_v38, %v3602_v30 }
 0xa23   :  { %v3605_v29 = vmul.f32 0.125, %v3604_v26 }
 0xa25   :  { %v3606_v32 = vadd.f32 1e-05, %v3605_v29 }
 0xa27   :  { %5502 = vrsqrt.f32 %v3606_v32 }
 0xa34   :  { %v5503_v37 = vpop.eup %5502 }
 0xa35   :  { %v3608_v33 = vmul.f32 %v6221_v54, %v5503_v37 }
 0xa37   :  { %v3609_v35 = vmul.f32 %v3608_v33, %v3596_v21  ;;  %v3617_v13 = vrot.slane %v3608_v33, %v3616_v34 }
 0xa39   :  { %v3611_v23 = vrot.slane %v3609_v35, 7  ;;  %v3618_v12 = vmul.f32 %v3617_v13, %v3589_v50 }
 0xa3b   :  { %v3613_v17 = vsub.f32 %v6221_v54, %v3611_v23 }
 0xa3d   :  { %v3622_v36 = vrot.slane %v3613_v17, %v3621_v14 }
 0xa3f   :  { %v3623_v39 = vadd.f32 %v3622_v36, %v3618_v12 }
 0xa41   :  { %v3624_v41 = vmax.f32 %v3623_v39, 0.0 }
 0xa43   :  { %v3626_v42 = vpack.c.bf16 %v3624_v41, %v3624_v41  ;;  %3625 = vst [vmem:[#allocation2] sm:$0xff] %v3624_v41 }
 0xa45   :  { %5282 = vmatmul.mubr.bf16.vlgmr.msra.gmra.mxu0 %v3626_v42 }
 0xa46   :  { %5518 = shalt.err (!%p5515_p4)
}
 0xa47   :  { %3776 = dma.vmem_to_hbm [thread:$0]  %s3774_s5, 128, %s6682_s8, [#allocation3]   ;;  %v3757_v31 = vsub.s32 6, %v5772_v61  ;;  %v3762_v6 = vsub.s32 7, %v5772_v61 }
 0xb05   :  { %v3725_v8 = vpop.f32.mrf.mxu0 }
 0xb06   :  { %v3731_v43 = vrot.slane %v3725_v8, 4 }
 0xb07   :  { %v5283_v44 = vpop.f32.mrf.mxu0 }
 0xb08   :  { %v3732_v11 = vadd.f32 %v3731_v43, %v3725_v8 }
 0xb09   :  { %v3728_v47 = vpop.f32.mrf.mxu0 }
 0xb0a   :  { %v3733_v48 = vrot.slane %v3732_v11, 2 }
 0xb0b   :  { %v5284_v2 = vpop.f32.mrf.mxu0 }
 0xb0c   :  { %v3734_v49 = vadd.f32 %v3733_v48, %v3732_v11 }
 0xb0e   :  { %v3735_v40 = vrot.slane %v3734_v49, 1 }
 0xb10   :  { %v3736_v5 = vadd.f32 %v3735_v40, %v3734_v49 }
 0xb12   :  { %v3737_v51 = vmul.f32 0.125, %v3736_v5 }
 0xb14   :  { %v3738_v52 = vsub.f32 %v3725_v8, %v3737_v51 }
 0xb16   :  { %v3739_v53 = vmul.f32 %v3738_v52, %v3738_v52 }
 0xb18   :  { %v3740_v59 = vrot.slane %v3739_v53, 4 }
 0xb1a   :  { %v3741_v56 = vadd.f32 %v3740_v59, %v3739_v53 }
 0xb1c   :  { %v3742_v62 = vrot.slane %v3741_v56, 2 }
 0xb1e   :  { %v3743_v57 = vadd.f32 %v3742_v62, %v3741_v56 }
 0xb20   :  { %v3744_v60 = vrot.slane %v3743_v57, 1 }
 0xb22   :  { %v3745_v63 = vadd.f32 %v3744_v60, %v3743_v57 }
 0xb24   :  { %v3746_v0 = vmul.f32 0.125, %v3745_v63 }
 0xb26   :  { %v3747_v55 = vadd.f32 1e-05, %v3746_v0 }
 0xb28   :  { %5504 = vrsqrt.f32 %v3747_v55 }
 0xb35   :  { %v5505_v58 = vpop.eup %5504 }
 0xb36   :  { %v3749_v1 = vmul.f32 %v6221_v54, %v5505_v58 }
 0xb38   :  { %v3750_v3 = vmul.f32 %v3749_v1, %v3737_v51  ;;  %v3758_v4 = vrot.slane %v3749_v1, %v3757_v31 }
 0xb3a   :  { %v3752_v45 = vrot.slane %v3750_v3, 7  ;;  %v3759_v7 = vmul.f32 %v3758_v4, %v3725_v8 }
 0xb3c   :  { %v3754_v50 = vsub.f32 %v6221_v54, %v3752_v45 }
 0xb3e   :  { %v3763_v9 = vrot.slane %v3754_v50, %v3762_v6 }
 0xb40   :  { %v3764_v10 = vadd.f32 %v3763_v9, %v3759_v7 }
 0xb42   :  { %v3765_v20 = vmax.f32 %v3764_v10, 0.0 }
 0xb44   :  { %3766 = vst [vmem:[%s6683_s9] sm:$0xff] %v3765_v20 }
 0xb45   :  { %5527 = dma.done.wait [#allocation3], 128  }
 0xb46   :  { %5528 = vsyncadd [#allocation3], 4294967168 }
 0xb47   :  { %3784 = vsyncpa [#allocation3], 1 }

</bundles_post_ra>
